<compile_context>
chip_gen: v7x
topology: tpu7x:2x2x1
jax: 0.10.0
libtpu: 0.0.40
codegen_flags: <defaults>
</compile_context>

<pallas_src>
import functools
import math

import jax
import jax.numpy as jnp
import numpy as np
from jax.experimental import pallas as pl
from jax.experimental.pallas import tpu as pltpu

LANE = 128      # minimum lane padding for feature dims
SUBLANE = 16    # bf16 sublane packing: batch tiles are multiples of this


def _round_up(n, m):
    return ((n + m - 1) // m) * m


def _pad2(a, rows, cols):
    return jnp.pad(a, ((0, rows - a.shape[0]), (0, cols - a.shape[1])))


def _tpu_generation():
    try:
        kind = jax.devices()[0].device_kind.lower()
    except Exception:
        return 6
    for g in (7, 6, 5, 4, 3, 2):
        if ("v%d" % g) in kind or ("tpu%d" % g) in kind:
            return g
    return 6


def _physical_vmem_bytes(gen):
    if gen >= 7:
        default = 64 << 20          # v7x: 64 MiB per TensorCore
    elif gen >= 4:
        default = 128 << 20         # v4/v5e/v6e: 128 MiB
    else:
        default = 16 << 20
    try:
        v = getattr(pltpu.get_tpu_info(), "vmem_capacity_bytes", None)
        if v:
            return int(v)
    except Exception:
        pass
    return default


def _pad_dim(d, gen):
    # v6e/v7x MXUs are 256-wide; pad genuinely large dims to 256, small ones to 128.
    base = 256 if (gen >= 6 and d >= 256) else LANE
    return _round_up(d, base)


def _const_spec(shape, single_buffer):
    """BlockSpec for a grid-invariant (weight) block; single-buffered when supported."""
    if single_buffer and hasattr(pl, "Buffered"):
        try:
            return pl.BlockSpec(shape, lambda i: (0, 0), pipeline_mode=pl.Buffered(1))
        except Exception:
            pass
    return pl.BlockSpec(shape, lambda i: (0, 0))


def _xavier_uniform(key, shape, dtype=jnp.float32):
    fan_out, fan_in = shape
    bound = math.sqrt(6.0 / (fan_in + fan_out))
    return jax.random.uniform(key, shape, dtype=dtype, minval=-bound, maxval=bound)


def init_contextnetv4_params(key, input_size, hidden_params, feat_dim, n_prototypes):
    """PyTorch-layout params: [W0,b0, W1,b1, ..., Wfeat,bfeat, Wproto], W as (out, in)."""
    params = []
    in_dim = input_size
    for n_units in hidden_params:
        key, wk = jax.random.split(key)
        params.append(_xavier_uniform(wk, (n_units, in_dim)))
        params.append(jnp.zeros((n_units,), jnp.float32))
        in_dim = n_units
    key, wk = jax.random.split(key)
    params.append(_xavier_uniform(wk, (feat_dim, in_dim)))
    params.append(jnp.zeros((feat_dim,), jnp.float32))
    key, wk = jax.random.split(key)
    params.append(_xavier_uniform(wk, (n_prototypes, feat_dim)))  # distLinear, bias=False
    return params


def _contextnetv4_kernel(n_hidden, n_prototypes, proto_pad, assign_lanes,
                         relu_in_bf16, *refs):
    """refs = x, [w_i, b_i]*n_hidden, w_feat, b_feat, cent_t, cent, out."""
    x_ref = refs[0]
    idx = 1

    h = x_ref[...]                                            # bf16 (TB, input_size)
    for _ in range(n_hidden):
        w_ref, b_ref = refs[idx], refs[idx + 1]
        idx += 2
        z = jnp.dot(h, w_ref[...], preferred_element_type=jnp.float32) + b_ref[...]
        if relu_in_bf16:
            h = jnp.maximum(z.astype(jnp.bfloat16), 0.0)      # bf16 VALU on v6e/v7x
        else:
            h = jnp.maximum(z, 0.0).astype(jnp.bfloat16)      # f32 VALU on v5e

    wf_ref, bf_ref = refs[idx], refs[idx + 1]
    idx += 2
    feat = jnp.dot(h, wf_ref[...], preferred_element_type=jnp.float32) + bf_ref[...]

    # L2-normalise features (padded lanes are zero -> do not perturb the norm).
    # Reciprocal goes to the EUP slot; VALU only does the broadcast multiply.
    norm = jnp.sqrt(jnp.sum(feat * feat, axis=-1, keepdims=True))
    inv_norm = pl.reciprocal(norm + 1e-5, approx=True)
    feat_n = feat * inv_norm                                  # (TB, feat_pad) f32

    cent_t_ref, cent_ref = refs[idx], refs[idx + 1]           # (feat_pad, proto_pad), (proto_pad, feat_pad)
    idx += 2

    # Cosine scores vs pre-normalised prototypes (distLinear, scale_factor = 10).
    scores = 10.0 * jnp.dot(feat_n.astype(jnp.bfloat16), cent_t_ref[...],
                            preferred_element_type=jnp.float32)      # (TB, proto_pad)

    lane = jax.lax.broadcasted_iota(jnp.int32, scores.shape, dimension=1)
    scores = jnp.where(lane < n_prototypes, scores, -1e30)    # mask padded prototype lanes

    # argmax along lanes (first-max tie-break) via max/min lane reductions.
    mx = jnp.max(scores, axis=-1, keepdims=True)
    lane_f = lane.astype(jnp.float32)
    assign_f = jnp.min(jnp.where(scores == mx, lane_f, float(proto_pad)),
                       axis=-1, keepdims=True)                # (TB, 1) exact integers

    # context = centroids[assignment] as one-hot MXU matmul (no data-dependent gather).
    onehot = (lane_f == assign_f).astype(jnp.bfloat16)        # (TB, proto_pad)
    context = jnp.dot(onehot, cent_ref[...], preferred_element_type=jnp.float32)

    # Single lane-dense output slab: [ feat_n | context | assignment (128 lanes) ].
    out_ref = refs[idx]
    assign_slab = jnp.broadcast_to(assign_f, (assign_f.shape[0], assign_lanes))
    out_ref[...] = jnp.concatenate([feat_n, context, assign_slab],
                                   axis=-1).astype(out_ref.dtype)


def prepare_params_for_kernel(params, hidden_params, input_size, feat_dim,
                              n_prototypes, gen, mxu_dtype=jnp.bfloat16):
    """Pad output feature dims, transpose weights to (in, out), cast MXU operands to
    bf16, and pre-normalise prototype rows (weight-only work hoisted out of the kernel).
    The first layer's input dim stays un-padded (x is passed with a full-extent last dim)."""
    kparams = []
    in_pad = input_size
    idx = 0
    for n_units in hidden_params:
        w, b = params[idx], params[idx + 1]
        idx += 2
        out_pad = _pad_dim(n_units, gen)
        kparams.append(_pad2(jnp.transpose(w).astype(mxu_dtype), in_pad, out_pad))
        kparams.append(_pad2(b[None, :].astype(jnp.float32), 1, out_pad))
        in_pad = out_pad
    wf, bf = params[idx], params[idx + 1]
    idx += 2
    feat_pad = _pad_dim(feat_dim, gen)
    kparams.append(_pad2(jnp.transpose(wf).astype(mxu_dtype), in_pad, feat_pad))
    kparams.append(_pad2(bf[None, :].astype(jnp.float32), 1, feat_pad))
    wp = params[idx]                                                  # (n_protos, feat_dim)
    proto_pad = _pad_dim(n_prototypes, gen)
    cent = (wp / (jnp.sqrt(jnp.sum(wp * wp, axis=1, keepdims=True)) + 1e-5)).astype(mxu_dtype)
    cent_pad = _pad2(cent, proto_pad, feat_pad)                       # (proto_pad, feat_pad)
    kparams.append(jnp.transpose(cent_pad))                           # (feat_pad, proto_pad): scores
    kparams.append(cent_pad)                                          # one-hot context gather
    return kparams


def contextnetv4_forward(x, params, hidden_params, feat_dim, n_prototypes,
                         *, block_b=512, mxu_dtype=jnp.bfloat16):
    """Equivalent to ContextNetv4.forward: returns (assignment, context, feat)."""
    gen = _tpu_generation()
    batch = x.shape[0]
    x2d = x.reshape(batch, -1)                     # x.view(-1, num_flat_features(x))
    input_size = x2d.shape[1]

    feat_pad = _pad_dim(feat_dim, gen)
    proto_pad = _pad_dim(n_prototypes, gen)
    hidden_pads = [_pad_dim(n, gen) for n in hidden_params]
    out_width = 2 * feat_pad + LANE                # feat | context | assignment, lane-dense

    kparams = prepare_params_for_kernel(params, hidden_params, input_size, feat_dim,
                                        n_prototypes, gen, mxu_dtype)

    want_single_buffer = hasattr(pl, "Buffered")
    buf_count = 1 if want_single_buffer else 2
    resident_bytes = buf_count * sum(int(p.size) * p.dtype.itemsize for p in kparams)

    phys_vmem = _physical_vmem_bytes(gen)
    vmem_limit = int(phys_vmem * 0.85)             # headroom for Mosaic internal scratch
    budget = int(vmem_limit * 0.9)

    # Batch tile: at least 2 tiles on v7x (2 TensorCores to shard "parallel" over),
    # one big tile on v5e/v6e; then shrink until the VMEM footprint fits the budget.
    min_tiles = 2 if gen >= 7 else 1
    tb = min(block_b, _round_up(max(SUBLANE, -(-batch // min_tiles)), SUBLANE))
    in_itemsize = np.dtype(mxu_dtype).itemsize
    max_width = max(hidden_pads + [feat_pad, proto_pad, out_width])

    def _tile_bytes(t):
        return (2 * t * input_size * in_itemsize   # x tile (double-buffered, bf16)
                + 2 * t * out_width * 4            # out tile (double-buffered, f32)
                + 6 * t * max_width * 4)           # live f32 intermediates (estimate)

    while tb > SUBLANE and resident_bytes + _tile_bytes(tb) > budget:
        tb = max(SUBLANE, _round_up(tb // 2, SUBLANE))
    # TODO(synk): if resident weights alone exceed the VMEM budget (huge layers), a
    # K-tiled grid axis with an accumulator would be needed; not required at these sizes.

    b_pad = _round_up(batch, tb)
    x_in = x2d.astype(mxu_dtype)                   # no lane padding: full-extent last dim
    if b_pad != batch:
        x_in = jnp.pad(x_in, ((0, b_pad - batch), (0, 0)))   # pad batch rows only

    n_hidden = len(hidden_params)
    relu_in_bf16 = gen >= 6
    kernel = functools.partial(_contextnetv4_kernel, n_hidden, n_prototypes,
                               proto_pad, LANE, relu_in_bf16)

    grid = (b_pad // tb,)
    x_spec = pl.BlockSpec((tb, input_size), lambda i: (i, 0))
    out_specs = pl.BlockSpec((tb, out_width), lambda i: (i, 0))
    cparams = pltpu.CompilerParams(
        dimension_semantics=("parallel",),         # independent batch tiles -> megacore
        vmem_limit_bytes=vmem_limit)

    def _call(single_buffer):
        in_specs = [x_spec] + [_const_spec(p.shape, single_buffer) for p in kparams]
        return pl.pallas_call(
            kernel,
            out_shape=jax.ShapeDtypeStruct((b_pad, out_width), jnp.float32),
            grid=grid,
            in_specs=in_specs,
            out_specs=out_specs,
            compiler_params=cparams,
        )(x_in, *kparams)

    if want_single_buffer:
        try:
            fc = _call(True)
        except Exception:
            fc = _call(False)                      # fall back to default double-buffering
    else:
        fc = _call(False)

    feat = fc[:batch, :feat_dim]
    context = fc[:batch, feat_pad:feat_pad + feat_dim]
    assignment = fc[:batch, 2 * feat_pad].astype(jnp.int32)   # exact small ints in f32
    return assignment, context, feat


def _reference_forward(x, params, hidden_params, feat_dim, n_prototypes,
                       mxu_dtype=jnp.bfloat16):
    """Pure-JAX ContextNetv4 forward with the same bf16-operand / f32-accumulate scheme."""
    h = x.reshape(x.shape[0], -1).astype(mxu_dtype)
    idx = 0
    for _ in hidden_params:
        w, b = params[idx], params[idx + 1]
        idx += 2
        z = jnp.dot(h, jnp.transpose(w).astype(mxu_dtype),
                    preferred_element_type=jnp.float32) + b[None, :]
        h = jnp.maximum(z, 0.0).astype(mxu_dtype)
    wf, bf = params[idx], params[idx + 1]
    idx += 2
    feat = jnp.dot(h, jnp.transpose(wf).astype(mxu_dtype),
                   preferred_element_type=jnp.float32) + bf[None, :]
    norm = jnp.sqrt(jnp.sum(feat * feat, axis=-1, keepdims=True))
    feat_n = feat / (norm + 1e-5)
    wp = params[idx]
    cent = (wp / (jnp.sqrt(jnp.sum(wp * wp, axis=1, keepdims=True)) + 1e-5)).astype(mxu_dtype)
    scores = 10.0 * jnp.dot(feat_n.astype(mxu_dtype), jnp.transpose(cent),
                            preferred_element_type=jnp.float32)
    assignment = jnp.argmax(scores, axis=1).astype(jnp.int32)
    context = cent[assignment].astype(jnp.float32)
    return assignment, context, feat_n


if __name__ == "__main__":
    batch = 4
    input_shape = (batch, 2, 4, 4)   # flattens to input_size = 32
    input_size = 32
    hidden_params = (32, 32)
    feat_dim = 16
    n_prototypes = 8

    key = jax.random.PRNGKey(0)
    key, xk, pk = jax.random.split(key, 3)
    x = jax.random.normal(xk, input_shape, dtype=jnp.float32)
    params = init_contextnetv4_params(pk, input_size, hidden_params, feat_dim, n_prototypes)

    assignment, context, feat = contextnetv4_forward(
        x, params, hidden_params, feat_dim, n_prototypes)
    jax.block_until_ready((assignment, context, feat))

    a_ref, c_ref, f_ref = _reference_forward(x, params, hidden_params, feat_dim, n_prototypes)

    assert assignment.shape == (batch,)
    assert context.shape == (batch, feat_dim)
    assert feat.shape == (batch, feat_dim)
    assert bool(jnp.array_equal(assignment, a_ref))
    assert bool(jnp.allclose(feat, f_ref, atol=2e-3, rtol=2e-3))
    assert bool(jnp.allclose(context, c_ref, atol=2e-3, rtol=2e-3))

    print("KERNEL_OK")
</pallas_src>

<mosaic_0001>
module attributes {stable_mosaic.version = 11 : i64} {
  func.func @_contextnetv4_kernel(%arg0: i32, %arg1: memref<16x32xbf16, #tpu.memory_space<vmem>>, %arg2: memref<32x128xbf16, #tpu.memory_space<vmem>>, %arg3: memref<1x128xf32, #tpu.memory_space<vmem>>, %arg4: memref<128x128xbf16, #tpu.memory_space<vmem>>, %arg5: memref<1x128xf32, #tpu.memory_space<vmem>>, %arg6: memref<128x128xbf16, #tpu.memory_space<vmem>>, %arg7: memref<1x128xf32, #tpu.memory_space<vmem>>, %arg8: memref<128x128xbf16, #tpu.memory_space<vmem>>, %arg9: memref<128x128xbf16, #tpu.memory_space<vmem>>, %arg10: memref<16x384xf32, #tpu.memory_space<vmem>>) attributes {dimension_semantics = [#tpu.dimension_semantics<parallel>], iteration_bounds = array<i64: 1>, scalar_prefetch = 0 : i64, scratch_operands = 0 : i64, tpu.core_type = #tpu.core_type<tc>, window_params = [{transform_indices = @transform_0, window_bounds = array<i64: 16, 32>}, {pipeline_mode = #tpu.pipeline_mode<synchronous>, transform_indices = @transform_1, window_bounds = array<i64: 32, 128>}, {pipeline_mode = #tpu.pipeline_mode<synchronous>, transform_indices = @transform_2, window_bounds = array<i64: 1, 128>}, {pipeline_mode = #tpu.pipeline_mode<synchronous>, transform_indices = @transform_3, window_bounds = array<i64: 128, 128>}, {pipeline_mode = #tpu.pipeline_mode<synchronous>, transform_indices = @transform_4, window_bounds = array<i64: 1, 128>}, {pipeline_mode = #tpu.pipeline_mode<synchronous>, transform_indices = @transform_5, window_bounds = array<i64: 128, 128>}, {pipeline_mode = #tpu.pipeline_mode<synchronous>, transform_indices = @transform_6, window_bounds = array<i64: 1, 128>}, {pipeline_mode = #tpu.pipeline_mode<synchronous>, transform_indices = @transform_7, window_bounds = array<i64: 128, 128>}, {pipeline_mode = #tpu.pipeline_mode<synchronous>, transform_indices = @transform_8, window_bounds = array<i64: 128, 128>}, {transform_indices = @transform_9, window_bounds = array<i64: 16, 384>}]} {
    %c0 = arith.constant 0 : index
    %c0_0 = arith.constant 0 : index
    %0 = vector.load %arg1[%c0, %c0_0] : memref<16x32xbf16, #tpu.memory_space<vmem>>, vector<16x32xbf16>
    %c0_1 = arith.constant 0 : index
    %c0_2 = arith.constant 0 : index
    %1 = vector.load %arg2[%c0_1, %c0_2] : memref<32x128xbf16, #tpu.memory_space<vmem>>, vector<32x128xbf16>
    %cst = arith.constant dense<0.000000e+00> : vector<16x128xf32>
    %2 = tpu.matmul %0, %1, %cst {dimension_numbers = #tpu.dot_dimension_numbers<[1], [0], [0], [1], [0, 0, 1, 1], [], []>} : vector<16x32xbf16>, vector<32x128xbf16>, vector<16x128xf32> -> vector<16x128xf32>
    %c0_3 = arith.constant 0 : index
    %c0_4 = arith.constant 0 : index
    %3 = vector.load %arg3[%c0_3, %c0_4] : memref<1x128xf32, #tpu.memory_space<vmem>>, vector<1x128xf32>
    %4 = vector.broadcast %3 : vector<1x128xf32> to vector<16x128xf32>
    %5 = arith.addf %2, %4 : vector<16x128xf32>
    %6 = arith.truncf %5 : vector<16x128xf32> to vector<16x128xbf16>
    %cst_5 = arith.constant 0.000000e+00 : bf16
    %7 = vector.broadcast %cst_5 : bf16 to vector<16x128xbf16>
    %8 = arith.maximumf %6, %7 : vector<16x128xbf16>
    %c0_6 = arith.constant 0 : index
    %c0_7 = arith.constant 0 : index
    %9 = vector.load %arg4[%c0_6, %c0_7] : memref<128x128xbf16, #tpu.memory_space<vmem>>, vector<128x128xbf16>
    %cst_8 = arith.constant dense<0.000000e+00> : vector<16x128xf32>
    %10 = tpu.matmul %8, %9, %cst_8 {dimension_numbers = #tpu.dot_dimension_numbers<[1], [0], [0], [1], [0, 0, 1, 1], [], []>} : vector<16x128xbf16>, vector<128x128xbf16>, vector<16x128xf32> -> vector<16x128xf32>
    %c0_9 = arith.constant 0 : index
    %c0_10 = arith.constant 0 : index
    %11 = vector.load %arg5[%c0_9, %c0_10] : memref<1x128xf32, #tpu.memory_space<vmem>>, vector<1x128xf32>
    %12 = vector.broadcast %11 : vector<1x128xf32> to vector<16x128xf32>
    %13 = arith.addf %10, %12 : vector<16x128xf32>
    %14 = arith.truncf %13 : vector<16x128xf32> to vector<16x128xbf16>
    %cst_11 = arith.constant 0.000000e+00 : bf16
    %15 = vector.broadcast %cst_11 : bf16 to vector<16x128xbf16>
    %16 = arith.maximumf %14, %15 : vector<16x128xbf16>
    %c0_12 = arith.constant 0 : index
    %c0_13 = arith.constant 0 : index
    %17 = vector.load %arg6[%c0_12, %c0_13] : memref<128x128xbf16, #tpu.memory_space<vmem>>, vector<128x128xbf16>
    %cst_14 = arith.constant dense<0.000000e+00> : vector<16x128xf32>
    %18 = tpu.matmul %16, %17, %cst_14 {dimension_numbers = #tpu.dot_dimension_numbers<[1], [0], [0], [1], [0, 0, 1, 1], [], []>} : vector<16x128xbf16>, vector<128x128xbf16>, vector<16x128xf32> -> vector<16x128xf32>
    %c0_15 = arith.constant 0 : index
    %c0_16 = arith.constant 0 : index
    %19 = vector.load %arg7[%c0_15, %c0_16] : memref<1x128xf32, #tpu.memory_space<vmem>>, vector<1x128xf32>
    %20 = vector.broadcast %19 : vector<1x128xf32> to vector<16x128xf32>
    %21 = arith.addf %18, %20 : vector<16x128xf32>
    %22 = arith.mulf %21, %21 : vector<16x128xf32>
    %cst_17 = arith.constant dense<0.000000e+00> : vector<16xf32>
    %23 = vector.multi_reduction <add>, %22, %cst_17 [1] : vector<16x128xf32> to vector<16xf32>
    %24 = vector.shape_cast %23 : vector<16xf32> to vector<16x1xf32>
    %25 = math.sqrt %24 : vector<16x1xf32>
    %cst_18 = arith.constant 9.99999974E-6 : f32
    %26 = vector.broadcast %cst_18 : f32 to vector<16x1xf32>
    %27 = arith.addf %25, %26 : vector<16x1xf32>
    %28 = tpu.reciprocal %27 {approx = true} : vector<16x1xf32> -> vector<16x1xf32>
    %29 = vector.broadcast %28 : vector<16x1xf32> to vector<16x128xf32>
    %30 = arith.mulf %21, %29 : vector<16x128xf32>
    %31 = arith.truncf %30 : vector<16x128xf32> to vector<16x128xbf16>
    %c0_19 = arith.constant 0 : index
    %c0_20 = arith.constant 0 : index
    %32 = vector.load %arg8[%c0_19, %c0_20] : memref<128x128xbf16, #tpu.memory_space<vmem>>, vector<128x128xbf16>
    %cst_21 = arith.constant dense<0.000000e+00> : vector<16x128xf32>
    %33 = tpu.matmul %31, %32, %cst_21 {dimension_numbers = #tpu.dot_dimension_numbers<[1], [0], [0], [1], [0, 0, 1, 1], [], []>} : vector<16x128xbf16>, vector<128x128xbf16>, vector<16x128xf32> -> vector<16x128xf32>
    %cst_22 = arith.constant 1.000000e+01 : f32
    %34 = vector.broadcast %cst_22 : f32 to vector<16x128xf32>
    %35 = arith.mulf %34, %33 : vector<16x128xf32>
    %36 = tpu.iota {dimensions = array<i32: 1>} : vector<16x128xi32>
    %c8_i32 = arith.constant 8 : i32
    %37 = vector.broadcast %c8_i32 : i32 to vector<16x128xi32>
    %38 = arith.cmpi slt, %36, %37 : vector<16x128xi32>
    %cst_23 = arith.constant -1.000000e+30 : f32
    %39 = vector.broadcast %cst_23 : f32 to vector<16x128xf32>
    %40 = arith.select %38, %35, %39 : vector<16x128xi1>, vector<16x128xf32>
    %cst_24 = arith.constant dense<0xFF800000> : vector<16xf32>
    %41 = vector.multi_reduction <maximumf>, %40, %cst_24 [1] : vector<16x128xf32> to vector<16xf32>
    %42 = vector.shape_cast %41 : vector<16xf32> to vector<16x1xf32>
    %43 = arith.sitofp %36 : vector<16x128xi32> to vector<16x128xf32>
    %44 = vector.broadcast %42 : vector<16x1xf32> to vector<16x128xf32>
    %45 = arith.cmpf oeq, %40, %44 : vector<16x128xf32>
    %cst_25 = arith.constant 1.280000e+02 : f32
    %46 = vector.broadcast %cst_25 : f32 to vector<16x128xf32>
    %47 = arith.select %45, %43, %46 : vector<16x128xi1>, vector<16x128xf32>
    %cst_26 = arith.constant dense<0x7F800000> : vector<16xf32>
    %48 = vector.multi_reduction <minimumf>, %47, %cst_26 [1] : vector<16x128xf32> to vector<16xf32>
    %49 = vector.shape_cast %48 : vector<16xf32> to vector<16x1xf32>
    %50 = vector.broadcast %49 : vector<16x1xf32> to vector<16x128xf32>
    %51 = arith.cmpf oeq, %43, %50 : vector<16x128xf32>
    %52 = arith.extui %51 : vector<16x128xi1> to vector<16x128xi32>
    %53 = arith.sitofp %52 : vector<16x128xi32> to vector<16x128xf32>
    %54 = arith.truncf %53 : vector<16x128xf32> to vector<16x128xbf16>
    %c0_27 = arith.constant 0 : index
    %c0_28 = arith.constant 0 : index
    %55 = vector.load %arg9[%c0_27, %c0_28] : memref<128x128xbf16, #tpu.memory_space<vmem>>, vector<128x128xbf16>
    %cst_29 = arith.constant dense<0.000000e+00> : vector<16x128xf32>
    %56 = tpu.matmul %54, %55, %cst_29 {dimension_numbers = #tpu.dot_dimension_numbers<[1], [0], [0], [1], [0, 0, 1, 1], [], []>} : vector<16x128xbf16>, vector<128x128xbf16>, vector<16x128xf32> -> vector<16x128xf32>
    %57 = vector.shape_cast %49 : vector<16x1xf32> to vector<16x1xf32>
    %58 = vector.broadcast %57 : vector<16x1xf32> to vector<16x128xf32>
    %59 = tpu.concatenate %30, %56, %58 in 1 : vector<16x128xf32>, vector<16x128xf32>, vector<16x128xf32> -> vector<16x384xf32>
    %c0_30 = arith.constant 0 : index
    %c0_31 = arith.constant 0 : index
    %60 = vector.load %arg10[%c0_30, %c0_31] : memref<16x384xf32, #tpu.memory_space<vmem>>, vector<16x384xf32>
    tpu.vector_store %arg10[%c0_30, %c0_31], %59 {strides = array<i32>} : memref<16x384xf32, #tpu.memory_space<vmem>>, vector<16x384xf32>,
    return
  }
  func.func @transform_0(%arg0: i32) -> (i32, i32) {
    %c0_i32 = arith.constant 0 : i32
    %c0_i32_0 = arith.constant 0 : i32
    return %arg0, %c0_i32 : i32, i32
  }
  func.func @transform_1(%arg0: i32) -> (i32, i32) {
    %c0_i32 = arith.constant 0 : i32
    %c0_i32_0 = arith.constant 0 : i32
    %c0_i32_1 = arith.constant 0 : i32
    return %c0_i32, %c0_i32_0 : i32, i32
  }
  func.func @transform_2(%arg0: i32) -> (i32, i32) {
    %c0_i32 = arith.constant 0 : i32
    %c0_i32_0 = arith.constant 0 : i32
    %c0_i32_1 = arith.constant 0 : i32
    return %c0_i32, %c0_i32_0 : i32, i32
  }
  func.func @transform_3(%arg0: i32) -> (i32, i32) {
    %c0_i32 = arith.constant 0 : i32
    %c0_i32_0 = arith.constant 0 : i32
    %c0_i32_1 = arith.constant 0 : i32
    return %c0_i32, %c0_i32_0 : i32, i32
  }
  func.func @transform_4(%arg0: i32) -> (i32, i32) {
    %c0_i32 = arith.constant 0 : i32
    %c0_i32_0 = arith.constant 0 : i32
    %c0_i32_1 = arith.constant 0 : i32
    return %c0_i32, %c0_i32_0 : i32, i32
  }
  func.func @transform_5(%arg0: i32) -> (i32, i32) {
    %c0_i32 = arith.constant 0 : i32
    %c0_i32_0 = arith.constant 0 : i32
    %c0_i32_1 = arith.constant 0 : i32
    return %c0_i32, %c0_i32_0 : i32, i32
  }
  func.func @transform_6(%arg0: i32) -> (i32, i32) {
    %c0_i32 = arith.constant 0 : i32
    %c0_i32_0 = arith.constant 0 : i32
    %c0_i32_1 = arith.constant 0 : i32
    return %c0_i32, %c0_i32_0 : i32, i32
  }
  func.func @transform_7(%arg0: i32) -> (i32, i32) {
    %c0_i32 = arith.constant 0 : i32
    %c0_i32_0 = arith.constant 0 : i32
    %c0_i32_1 = arith.constant 0 : i32
    return %c0_i32, %c0_i32_0 : i32, i32
  }
  func.func @transform_8(%arg0: i32) -> (i32, i32) {
    %c0_i32 = arith.constant 0 : i32
    %c0_i32_0 = arith.constant 0 : i32
    %c0_i32_1 = arith.constant 0 : i32
    return %c0_i32, %c0_i32_0 : i32, i32
  }
  func.func @transform_9(%arg0: i32) -> (i32, i32) {
    %c0_i32 = arith.constant 0 : i32
    %c0_i32_0 = arith.constant 0 : i32
    return %arg0, %c0_i32 : i32, i32
  }
}

module attributes {stable_mosaic.version = 11 : i64} {
  func.func @_contextnetv4_kernel(%arg0: i32, %arg1: memref<16x32xbf16, #tpu.memory_space<vmem>>, %arg2: memref<32x128xbf16, #tpu.memory_space<vmem>>, %arg3: memref<1x128xf32, #tpu.memory_space<vmem>>, %arg4: memref<128x128xbf16, #tpu.memory_space<vmem>>, %arg5: memref<1x128xf32, #tpu.memory_space<vmem>>, %arg6: memref<128x128xbf16, #tpu.memory_space<vmem>>, %arg7: memref<1x128xf32, #tpu.memory_space<vmem>>, %arg8: memref<128x128xbf16, #tpu.memory_space<vmem>>, %arg9: memref<128x128xbf16, #tpu.memory_space<vmem>>, %arg10: memref<16x384xf32, #tpu.memory_space<vmem>>) attributes {dimension_semantics = [#tpu.dimension_semantics<parallel>], iteration_bounds = array<i64: 1>, scalar_prefetch = 0 : i64, scratch_operands = 0 : i64, tpu.core_type = #tpu.core_type<tc>, window_params = [{transform_indices = @transform_0, window_bounds = array<i64: 16, 32>}, {pipeline_mode = #tpu.pipeline_mode<synchronous>, transform_indices = @transform_1, window_bounds = array<i64: 32, 128>}, {pipeline_mode = #tpu.pipeline_mode<synchronous>, transform_indices = @transform_2, window_bounds = array<i64: 1, 128>}, {pipeline_mode = #tpu.pipeline_mode<synchronous>, transform_indices = @transform_3, window_bounds = array<i64: 128, 128>}, {pipeline_mode = #tpu.pipeline_mode<synchronous>, transform_indices = @transform_4, window_bounds = array<i64: 1, 128>}, {pipeline_mode = #tpu.pipeline_mode<synchronous>, transform_indices = @transform_5, window_bounds = array<i64: 128, 128>}, {pipeline_mode = #tpu.pipeline_mode<synchronous>, transform_indices = @transform_6, window_bounds = array<i64: 1, 128>}, {pipeline_mode = #tpu.pipeline_mode<synchronous>, transform_indices = @transform_7, window_bounds = array<i64: 128, 128>}, {pipeline_mode = #tpu.pipeline_mode<synchronous>, transform_indices = @transform_8, window_bounds = array<i64: 128, 128>}, {transform_indices = @transform_9, window_bounds = array<i64: 16, 384>}]} {
    %c0 = arith.constant 0 : index
    %c0_0 = arith.constant 0 : index
    %0 = vector.load %arg1[%c0, %c0_0] : memref<16x32xbf16, #tpu.memory_space<vmem>>, vector<16x32xbf16>
    %c0_1 = arith.constant 0 : index
    %c0_2 = arith.constant 0 : index
    %1 = vector.load %arg2[%c0_1, %c0_2] : memref<32x128xbf16, #tpu.memory_space<vmem>>, vector<32x128xbf16>
    %cst = arith.constant dense<0.000000e+00> : vector<16x128xf32>
    %2 = tpu.matmul %0, %1, %cst {dimension_numbers = #tpu.dot_dimension_numbers<[1], [0], [0], [1], [0, 0, 1, 1], [], []>} : vector<16x32xbf16>, vector<32x128xbf16>, vector<16x128xf32> -> vector<16x128xf32>
    %c0_3 = arith.constant 0 : index
    %c0_4 = arith.constant 0 : index
    %3 = vector.load %arg3[%c0_3, %c0_4] : memref<1x128xf32, #tpu.memory_space<vmem>>, vector<1x128xf32>
    %4 = vector.broadcast %3 : vector<1x128xf32> to vector<16x128xf32>
    %5 = arith.addf %2, %4 : vector<16x128xf32>
    %6 = arith.truncf %5 : vector<16x128xf32> to vector<16x128xbf16>
    %cst_5 = arith.constant 0.000000e+00 : bf16
    %7 = vector.broadcast %cst_5 : bf16 to vector<16x128xbf16>
    %8 = arith.maximumf %6, %7 : vector<16x128xbf16>
    %c0_6 = arith.constant 0 : index
    %c0_7 = arith.constant 0 : index
    %9 = vector.load %arg4[%c0_6, %c0_7] : memref<128x128xbf16, #tpu.memory_space<vmem>>, vector<128x128xbf16>
    %cst_8 = arith.constant dense<0.000000e+00> : vector<16x128xf32>
    %10 = tpu.matmul %8, %9, %cst_8 {dimension_numbers = #tpu.dot_dimension_numbers<[1], [0], [0], [1], [0, 0, 1, 1], [], []>} : vector<16x128xbf16>, vector<128x128xbf16>, vector<16x128xf32> -> vector<16x128xf32>
    %c0_9 = arith.constant 0 : index
    %c0_10 = arith.constant 0 : index
    %11 = vector.load %arg5[%c0_9, %c0_10] : memref<1x128xf32, #tpu.memory_space<vmem>>, vector<1x128xf32>
    %12 = vector.broadcast %11 : vector<1x128xf32> to vector<16x128xf32>
    %13 = arith.addf %10, %12 : vector<16x128xf32>
    %14 = arith.truncf %13 : vector<16x128xf32> to vector<16x128xbf16>
    %cst_11 = arith.constant 0.000000e+00 : bf16
    %15 = vector.broadcast %cst_11 : bf16 to vector<16x128xbf16>
    %16 = arith.maximumf %14, %15 : vector<16x128xbf16>
    %c0_12 = arith.constant 0 : index
    %c0_13 = arith.constant 0 : index
    %17 = vector.load %arg6[%c0_12, %c0_13] : memref<128x128xbf16, #tpu.memory_space<vmem>>, vector<128x128xbf16>
    %cst_14 = arith.constant dense<0.000000e+00> : vector<16x128xf32>
    %18 = tpu.matmul %16, %17, %cst_14 {dimension_numbers = #tpu.dot_dimension_numbers<[1], [0], [0], [1], [0, 0, 1, 1], [], []>} : vector<16x128xbf16>, vector<128x128xbf16>, vector<16x128xf32> -> vector<16x128xf32>
    %c0_15 = arith.constant 0 : index
    %c0_16 = arith.constant 0 : index
    %19 = vector.load %arg7[%c0_15, %c0_16] : memref<1x128xf32, #tpu.memory_space<vmem>>, vector<1x128xf32>
    %20 = vector.broadcast %19 : vector<1x128xf32> to vector<16x128xf32>
    %21 = arith.addf %18, %20 : vector<16x128xf32>
    %22 = arith.mulf %21, %21 : vector<16x128xf32>
    %cst_17 = arith.constant dense<0.000000e+00> : vector<16xf32>
    %23 = vector.multi_reduction <add>, %22, %cst_17 [1] : vector<16x128xf32> to vector<16xf32>
    %24 = vector.shape_cast %23 : vector<16xf32> to vector<16x1xf32>
    %25 = math.sqrt %24 : vector<16x1xf32>
    %cst_18 = arith.constant 9.99999974E-6 : f32
    %26 = vector.broadcast %cst_18 : f32 to vector<16x1xf32>
    %27 = arith.addf %25, %26 : vector<16x1xf32>
    %28 = tpu.reciprocal %27 {approx = true} : vector<16x1xf32> -> vector<16x1xf32>
    %29 = vector.broadcast %28 : vector<16x1xf32> to vector<16x128xf32>
    %30 = arith.mulf %21, %29 : vector<16x128xf32>
    %31 = arith.truncf %30 : vector<16x128xf32> to vector<16x128xbf16>
    %c0_19 = arith.constant 0 : index
    %c0_20 = arith.constant 0 : index
    %32 = vector.load %arg8[%c0_19, %c0_20] : memref<128x128xbf16, #tpu.memory_space<vmem>>, vector<128x128xbf16>
    %cst_21 = arith.constant dense<0.000000e+00> : vector<16x128xf32>
    %33 = tpu.matmul %31, %32, %cst_21 {dimension_numbers = #tpu.dot_dimension_numbers<[1], [0], [0], [1], [0, 0, 1, 1], [], []>} : vector<16x128xbf16>, vector<128x128xbf16>, vector<16x128xf32> -> vector<16x128xf32>
    %cst_22 = arith.constant 1.000000e+01 : f32
    %34 = vector.broadcast %cst_22 : f32 to vector<16x128xf32>
    %35 = arith.mulf %34, %33 : vector<16x128xf32>
    %36 = tpu.iota {dimensions = array<i32: 1>} : vector<16x128xi32>
    %c8_i32 = arith.constant 8 : i32
    %37 = vector.broadcast %c8_i32 : i32 to vector<16x128xi32>
    %38 = arith.cmpi slt, %36, %37 : vector<16x128xi32>
    %cst_23 = arith.constant -1.000000e+30 : f32
    %39 = vector.broadcast %cst_23 : f32 to vector<16x128xf32>
    %40 = arith.select %38, %35, %39 : vector<16x128xi1>, vector<16x128xf32>
    %cst_24 = arith.constant dense<0xFF800000> : vector<16xf32>
    %41 = vector.multi_reduction <maximumf>, %40, %cst_24 [1] : vector<16x128xf32> to vector<16xf32>
    %42 = vector.shape_cast %41 : vector<16xf32> to vector<16x1xf32>
    %43 = arith.sitofp %36 : vector<16x128xi32> to vector<16x128xf32>
    %44 = vector.broadcast %42 : vector<16x1xf32> to vector<16x128xf32>
    %45 = arith.cmpf oeq, %40, %44 : vector<16x128xf32>
    %cst_25 = arith.constant 1.280000e+02 : f32
    %46 = vector.broadcast %cst_25 : f32 to vector<16x128xf32>
    %47 = arith.select %45, %43, %46 : vector<16x128xi1>, vector<16x128xf32>
    %cst_26 = arith.constant dense<0x7F800000> : vector<16xf32>
    %48 = vector.multi_reduction <minimumf>, %47, %cst_26 [1] : vector<16x128xf32> to vector<16xf32>
    %49 = vector.shape_cast %48 : vector<16xf32> to vector<16x1xf32>
    %50 = vector.broadcast %49 : vector<16x1xf32> to vector<16x128xf32>
    %51 = arith.cmpf oeq, %43, %50 : vector<16x128xf32>
    %52 = arith.extui %51 : vector<16x128xi1> to vector<16x128xi32>
    %53 = arith.sitofp %52 : vector<16x128xi32> to vector<16x128xf32>
    %54 = arith.truncf %53 : vector<16x128xf32> to vector<16x128xbf16>
    %c0_27 = arith.constant 0 : index
    %c0_28 = arith.constant 0 : index
    %55 = vector.load %arg9[%c0_27, %c0_28] : memref<128x128xbf16, #tpu.memory_space<vmem>>, vector<128x128xbf16>
    %cst_29 = arith.constant dense<0.000000e+00> : vector<16x128xf32>
    %56 = tpu.matmul %54, %55, %cst_29 {dimension_numbers = #tpu.dot_dimension_numbers<[1], [0], [0], [1], [0, 0, 1, 1], [], []>} : vector<16x128xbf16>, vector<128x128xbf16>, vector<16x128xf32> -> vector<16x128xf32>
    %57 = vector.shape_cast %49 : vector<16x1xf32> to vector<16x1xf32>
    %58 = vector.broadcast %57 : vector<16x1xf32> to vector<16x128xf32>
    %59 = tpu.concatenate %30, %56, %58 in 1 : vector<16x128xf32>, vector<16x128xf32>, vector<16x128xf32> -> vector<16x384xf32>
    %c0_30 = arith.constant 0 : index
    %c0_31 = arith.constant 0 : index
    %60 = vector.load %arg10[%c0_30, %c0_31] : memref<16x384xf32, #tpu.memory_space<vmem>>, vector<16x384xf32>
    tpu.vector_store %arg10[%c0_30, %c0_31], %59 {strides = array<i32>} : memref<16x384xf32, #tpu.memory_space<vmem>>, vector<16x384xf32>,
    return
  }
  func.func @transform_0(%arg0: i32) -> (i32, i32) {
    %c0_i32 = arith.constant 0 : i32
    %c0_i32_0 = arith.constant 0 : i32
    return %arg0, %c0_i32 : i32, i32
  }
  func.func @transform_1(%arg0: i32) -> (i32, i32) {
    %c0_i32 = arith.constant 0 : i32
    %c0_i32_0 = arith.constant 0 : i32
    %c0_i32_1 = arith.constant 0 : i32
    return %c0_i32, %c0_i32_0 : i32, i32
  }
  func.func @transform_2(%arg0: i32) -> (i32, i32) {
    %c0_i32 = arith.constant 0 : i32
    %c0_i32_0 = arith.constant 0 : i32
    %c0_i32_1 = arith.constant 0 : i32
    return %c0_i32, %c0_i32_0 : i32, i32
  }
  func.func @transform_3(%arg0: i32) -> (i32, i32) {
    %c0_i32 = arith.constant 0 : i32
    %c0_i32_0 = arith.constant 0 : i32
    %c0_i32_1 = arith.constant 0 : i32
    return %c0_i32, %c0_i32_0 : i32, i32
  }
  func.func @transform_4(%arg0: i32) -> (i32, i32) {
    %c0_i32 = arith.constant 0 : i32
    %c0_i32_0 = arith.constant 0 : i32
    %c0_i32_1 = arith.constant 0 : i32
    return %c0_i32, %c0_i32_0 : i32, i32
  }
  func.func @transform_5(%arg0: i32) -> (i32, i32) {
    %c0_i32 = arith.constant 0 : i32
    %c0_i32_0 = arith.constant 0 : i32
    %c0_i32_1 = arith.constant 0 : i32
    return %c0_i32, %c0_i32_0 : i32, i32
  }
  func.func @transform_6(%arg0: i32) -> (i32, i32) {
    %c0_i32 = arith.constant 0 : i32
    %c0_i32_0 = arith.constant 0 : i32
    %c0_i32_1 = arith.constant 0 : i32
    return %c0_i32, %c0_i32_0 : i32, i32
  }
  func.func @transform_7(%arg0: i32) -> (i32, i32) {
    %c0_i32 = arith.constant 0 : i32
    %c0_i32_0 = arith.constant 0 : i32
    %c0_i32_1 = arith.constant 0 : i32
    return %c0_i32, %c0_i32_0 : i32, i32
  }
  func.func @transform_8(%arg0: i32) -> (i32, i32) {
    %c0_i32 = arith.constant 0 : i32
    %c0_i32_0 = arith.constant 0 : i32
    %c0_i32_1 = arith.constant 0 : i32
    return %c0_i32, %c0_i32_0 : i32, i32
  }
  func.func @transform_9(%arg0: i32) -> (i32, i32) {
    %c0_i32 = arith.constant 0 : i32
    %c0_i32_0 = arith.constant 0 : i32
    return %arg0, %c0_i32 : i32, i32
  }
}

</mosaic_0001>

<bundles_post_ra>
// kernel: tpu_custom_call.1
= control target key start
LH: loop header
LB: loop body
LE: loop exit
PB: predicated region body
PF: predicated region fallthrough
CT: control target
= control target key end

     0   :  { %14 = vsyncpa [#allocation3], 0  ;;  %s1471_s0 = inlined_call_operand.hbm [shape: bf16[16,32], index: 0, kind: input, shape index: {}]   ;;  %s1472_s1 = inlined_call_operand.hbm [shape: bf16[32,128], index: 1, kind: input, shape index: {}]   ;;  %s1473_s2 = inlined_call_operand.hbm [shape: f32[1,128], index: 2, kind: input, shape index: {}]   ;;  %s1474_s3 = inlined_call_operand.hbm [shape: bf16[128,128], index: 3, kind: input, shape index: {}]   ;;  %s1475_s4 = inlined_call_operand.hbm [shape: f32[1,128], index: 4, kind: input, shape index: {}]   ;;  %s1476_s5 = inlined_call_operand.hbm [shape: bf16[128,128], index: 5, kind: input, shape index: {}]   ;;  %s1477_s6 = inlined_call_operand.hbm [shape: f32[1,128], index: 6, kind: input, shape index: {}]   ;;  %s1478_s7 = inlined_call_operand.hbm [shape: bf16[128,128], index: 7, kind: input, shape index: {}]   ;;  %s1479_s8 = inlined_call_operand.hbm [shape: bf16[128,128], index: 8, kind: input, shape index: {}]   ;;  %s1480_s9 = inlined_call_operand.hbm [shape: f32[16,384], index: 9, kind: output, shape index: {}]  }
   0x1   :  { %15 = vsyncpa [#allocation6], 0 }
   0x2   :  { %16 = vsyncpa [#allocation9], 0 }
   0x3   :  { %17 = vsyncpa [#allocation12], 0 }
   0x4   :  { %18 = vsyncpa [#allocation15], 0 }
   0x5   :  { %19 = vsyncpa [#allocation4], 0  ;;  %s1207_s30 = smov [#allocation5]   ;;  %s1208_s11 = smov [#allocation8]  }
   0x6   :  { %s37_s10 = sshll.u32 %s1207_s30, 4  ;;  %s59_s12 = sshll.u32 %s1208_s11, 4  ;;  %s38_s10 = int_to_ptr.vmem [resolvable:$true] %s37_s10  ;;  %s1275_s12 = int_to_ptr.vmem [resolvable:$true] %s59_s12 }
   0x7   :  { %s975_s15 = scalar_lea.hbm %s1472_s1, 256 }
   0x8   :  { %p976_p0 = scmp.ne.s32.totalorder %s1472_s1, %s975_s15  ;;  %p979_p1 = scmp.lt.u32.totalorder %s975_s15, %s1472_s1 }
   0xa   :  { %p981_p2 = pnand %p979_p1, %p976_p0 }
   0xc   :  { %984 = shalt.err (!%p981_p2)
}
   0xd   :  { %s985_s20 = scalar_lea.vmem %s38_s10, 256  ;;  %p990_p4 = scmp.lt.s32.totalorder %s38_s10, %s38_s10 }
   0xe   :  { %p986_p3 = scmp.ne.s32.totalorder %s38_s10, %s985_s20  ;;  %p991_p5 = scmp.lt.s32.totalorder %s985_s20, %s985_s20 }
  0x10   :  { %p992_p6 = por %p991_p5, %p990_p4 }
  0x12   :  { %p993_p7 = pnand %p992_p6, %p986_p3 }
  0x14   :  { %996 = shalt.err (!%p993_p7)
}
  0x15   :  { %s1209_s21 = smov 64   ;;  %s1210_s22 = smov 4  }
  0x16   :  { %43 = dma.hbm_to_vmem [thread:$0]  %s1472_s1, 256, %s38_s10, [#allocation6], %s1209_s21, %s1209_s21, %s1210_s22  }
  0x17   :  { %s997_s27 = scalar_lea.hbm %s1474_s3, 1024 }
  0x18   :  { %p998_p8 = scmp.ne.s32.totalorder %s1474_s3, %s997_s27  ;;  %p1001_p9 = scmp.lt.u32.totalorder %s997_s27, %s1474_s3 }
  0x1a   :  { %p1003_p10 = pnand %p1001_p9, %p998_p8 }
  0x1c   :  { %1006 = shalt.err (!%p1003_p10)
}
  0x1d   :  { %s1007_s13 = scalar_lea.vmem %s1275_s12, 1024  ;;  %p1012_p12 = scmp.lt.s32.totalorder %s1275_s12, %s1275_s12 }
  0x1e   :  { %p1008_p11 = scmp.ne.s32.totalorder %s1275_s12, %s1007_s13  ;;  %p1013_p13 = scmp.lt.s32.totalorder %s1007_s13, %s1007_s13 }
  0x20   :  { %p1014_p0 = por %p1013_p13, %p1012_p12 }
  0x22   :  { %p1015_p1 = pnand %p1014_p0, %p1008_p11 }
  0x24   :  { %1018 = shalt.err (!%p1015_p1)
}
  0x25   :  { %65 = dma.hbm_to_vmem [thread:$0]  %s1474_s3, 1024, %s1275_s12, [#allocation9], %s1209_s21, %s1209_s21, %s1210_s22  }
  0x26   :  { %s1211_s14 = smov [#allocation11]   ;;  %s1212_s16 = smov [#allocation14]  }
  0x27   :  { %s81_s15 = sshll.u32 %s1211_s14, 4  ;;  %s103_s17 = sshll.u32 %s1212_s16, 4  ;;  %s82_s15 = int_to_ptr.vmem [resolvable:$true] %s81_s15  ;;  %s1312_s17 = int_to_ptr.vmem [resolvable:$true] %s103_s17 }
  0x28   :  { %s1019_s20 = scalar_lea.hbm %s1476_s5, 1024 }
  0x29   :  { %p1020_p2 = scmp.ne.s32.totalorder %s1476_s5, %s1019_s20  ;;  %p1023_p3 = scmp.lt.u32.totalorder %s1019_s20, %s1476_s5 }
  0x2b   :  { %p1025_p4 = pnand %p1023_p3, %p1020_p2 }
  0x2d   :  { %1028 = shalt.err (!%p1025_p4)
}
  0x2e   :  { %s1029_s3 = scalar_lea.vmem %s82_s15, 1024  ;;  %p1034_p6 = scmp.lt.s32.totalorder %s82_s15, %s82_s15 }
  0x2f   :  { %p1030_p5 = scmp.ne.s32.totalorder %s82_s15, %s1029_s3  ;;  %p1035_p7 = scmp.lt.s32.totalorder %s1029_s3, %s1029_s3 }
  0x31   :  { %p1036_p8 = por %p1035_p7, %p1034_p6 }
  0x33   :  { %p1037_p9 = pnand %p1036_p8, %p1030_p5 }
  0x35   :  { %1040 = shalt.err (!%p1037_p9)
}
  0x36   :  { %87 = dma.hbm_to_vmem [thread:$0]  %s1476_s5, 1024, %s82_s15, [#allocation12], %s1209_s21, %s1209_s21, %s1210_s22  }
  0x37   :  { %s1041_s30 = scalar_lea.hbm %s1478_s7, 1024 }
  0x38   :  { %p1042_p10 = scmp.ne.s32.totalorder %s1478_s7, %s1041_s30  ;;  %p1045_p11 = scmp.lt.u32.totalorder %s1041_s30, %s1478_s7 }
  0x3a   :  { %p1047_p12 = pnand %p1045_p11, %p1042_p10 }
  0x3c   :  { %1050 = shalt.err (!%p1047_p12)
}
  0x3d   :  { %s1051_s14 = scalar_lea.vmem %s1312_s17, 1024  ;;  %p1056_p0 = scmp.lt.s32.totalorder %s1312_s17, %s1312_s17 }
  0x3e   :  { %p1052_p13 = scmp.ne.s32.totalorder %s1312_s17, %s1051_s14  ;;  %p1057_p1 = scmp.lt.s32.totalorder %s1051_s14, %s1051_s14 }
  0x40   :  { %p1058_p2 = por %p1057_p1, %p1056_p0 }
  0x42   :  { %p1059_p3 = pnand %p1058_p2, %p1052_p13 }
  0x44   :  { %1062 = shalt.err (!%p1059_p3)
}
  0x45   :  { %109 = dma.hbm_to_vmem [thread:$0]  %s1478_s7, 1024, %s1312_s17, [#allocation15], %s1209_s21, %s1209_s21, %s1210_s22  }
  0x46   :  { %s1213_s16 = smov [#allocation2]   ;;  %s1214_s19 = smov [#allocation7]  }
  0x47   :  { %s25_s18 = sshll.u32 %s1213_s16, 4  ;;  %s50_s20 = sshll.u32 %s1214_s19, 4  ;;  %s26_s18 = int_to_ptr.vmem [resolvable:$true] %s25_s18  ;;  %s51_s20 = int_to_ptr.vmem [resolvable:$true] %s50_s20 }
  0x48   :  { %s1063_s25 = scalar_lea.hbm %s1471_s0, 128 }
  0x49   :  { %p1064_p4 = scmp.ne.s32.totalorder %s1471_s0, %s1063_s25  ;;  %p1067_p5 = scmp.lt.u32.totalorder %s1063_s25, %s1471_s0 }
  0x4b   :  { %p1069_p6 = pnand %p1067_p5, %p1064_p4 }
  0x4d   :  { %1072 = shalt.err (!%p1069_p6)
}
  0x4e   :  { %s1073_s7 = scalar_lea.vmem %s26_s18, 128  ;;  %p1078_p8 = scmp.lt.s32.totalorder %s26_s18, %s26_s18 }
  0x4f   :  { %p1074_p7 = scmp.ne.s32.totalorder %s26_s18, %s1073_s7  ;;  %p1079_p9 = scmp.lt.s32.totalorder %s1073_s7, %s1073_s7 }
  0x51   :  { %p1080_p10 = por %p1079_p9, %p1078_p8 }
  0x53   :  { %p1081_p11 = pnand %p1080_p10, %p1074_p7 }
  0x55   :  { %1084 = shalt.err (!%p1081_p11)
}
  0x56   :  { %31 = dma.hbm_to_vmem [thread:$0]  %s1471_s0, 128, %s26_s18, [#allocation3], %s1209_s21, %s1209_s21, %s1210_s22  }
  0x57   :  { %s1085_s11 = scalar_lea.hbm %s1473_s2, 16 }
  0x58   :  { %p1086_p12 = scmp.ne.s32.totalorder %s1473_s2, %s1085_s11  ;;  %p1089_p13 = scmp.lt.u32.totalorder %s1085_s11, %s1473_s2 }
  0x5a   :  { %p1091_p0 = pnand %p1089_p13, %p1086_p12 }
  0x5c   :  { %1094 = shalt.err (!%p1091_p0)
}
  0x5d   :  { %s1095_s5 = scalar_lea.vmem %s51_s20, 16  ;;  %s1099_s15 = scalar_lea.vmem %s51_s20, 32 }
  0x5e   :  { %p1096_p1 = scmp.ne.s32.totalorder %s51_s20, %s1095_s5  ;;  %p1100_p2 = scmp.lt.s32.totalorder %s51_s20, %s51_s20 }
  0x5f   :  { %p1101_p3 = scmp.lt.s32.totalorder %s1099_s15, %s1095_s5 }
  0x61   :  { %p1102_p4 = por %p1101_p3, %p1100_p2 }
  0x63   :  { %p1103_p5 = pnand %p1102_p4, %p1096_p1 }
  0x65   :  { %1106 = shalt.err (!%p1103_p5)
}
  0x66   :  { %53 = dma.hbm_to_vmem [thread:$0]  %s1473_s2, 16, %s51_s20, [#allocation6]  }
  0x67   :  { %s1215_s18 = smov [#allocation10]   ;;  %s1216_s23 = smov [#allocation13]  }
  0x68   :  { %s72_s19 = sshll.u32 %s1215_s18, 4  ;;  %s94_s24 = sshll.u32 %s1216_s23, 4  ;;  %s73_s19 = int_to_ptr.vmem [resolvable:$true] %s72_s19  ;;  %s95_s24 = int_to_ptr.vmem [resolvable:$true] %s94_s24 }
  0x69   :  { %s1107_s3 = scalar_lea.hbm %s1475_s4, 16 }
  0x6a   :  { %p1108_p6 = scmp.ne.s32.totalorder %s1475_s4, %s1107_s3  ;;  %p1111_p7 = scmp.lt.u32.totalorder %s1107_s3, %s1475_s4 }
  0x6c   :  { %p1113_p8 = pnand %p1111_p7, %p1108_p6 }
  0x6e   :  { %1116 = shalt.err (!%p1113_p8)
}
  0x6f   :  { %s1117_s2 = scalar_lea.vmem %s73_s19, 16  ;;  %s1121_s20 = scalar_lea.vmem %s73_s19, 32 }
  0x70   :  { %p1118_p9 = scmp.ne.s32.totalorder %s73_s19, %s1117_s2  ;;  %p1122_p10 = scmp.lt.s32.totalorder %s73_s19, %s73_s19 }
  0x71   :  { %p1123_p11 = scmp.lt.s32.totalorder %s1121_s20, %s1117_s2 }
  0x73   :  { %p1124_p12 = por %p1123_p11, %p1122_p10 }
  0x75   :  { %p1125_p13 = pnand %p1124_p12, %p1118_p9 }
  0x77   :  { %1128 = shalt.err (!%p1125_p13)
}
  0x78   :  { %75 = dma.hbm_to_vmem [thread:$0]  %s1475_s4, 16, %s73_s19, [#allocation9]  }
  0x79   :  { %s1129_s13 = scalar_lea.hbm %s1477_s6, 16 }
  0x7a   :  { %p1130_p0 = scmp.ne.s32.totalorder %s1477_s6, %s1129_s13  ;;  %p1133_p1 = scmp.lt.u32.totalorder %s1129_s13, %s1477_s6 }
  0x7c   :  { %p1135_p2 = pnand %p1133_p1, %p1130_p0 }
  0x7e   :  { %1138 = shalt.err (!%p1135_p2)
}
  0x7f   :  { %s1139_s15 = scalar_lea.vmem %s95_s24, 16  ;;  %s1143_s0 = scalar_lea.vmem %s95_s24, 32 }
  0x80   :  { %p1140_p3 = scmp.ne.s32.totalorder %s95_s24, %s1139_s15  ;;  %p1144_p4 = scmp.lt.s32.totalorder %s95_s24, %s95_s24 }
  0x81   :  { %p1145_p5 = scmp.lt.s32.totalorder %s1143_s0, %s1139_s15 }
  0x83   :  { %p1146_p6 = por %p1145_p5, %p1144_p4 }
  0x85   :  { %p1147_p7 = pnand %p1146_p6, %p1140_p3 }
  0x87   :  { %1150 = shalt.err (!%p1147_p7)
}
  0x88   :  { %97 = dma.hbm_to_vmem [thread:$0]  %s1477_s6, 16, %s95_s24, [#allocation12]  }
  0x89   :  { %s1217_s18 = smov [#allocation16]   ;;  %s1151_s26 = scalar_lea.hbm %s1479_s8, 1024 }
  0x8a   :  { %s115_s19 = sshll.u32 %s1217_s18, 4  ;;  %p1152_p8 = scmp.ne.s32.totalorder %s1479_s8, %s1151_s26  ;;  %s116_s19 = int_to_ptr.vmem [resolvable:$true] %s115_s19 }
  0x8b   :  { %p1155_p9 = scmp.lt.u32.totalorder %s1151_s26, %s1479_s8 }
  0x8d   :  { %p1157_p10 = pnand %p1155_p9, %p1152_p8 }
  0x8f   :  { %1160 = shalt.err (!%p1157_p10)
}
  0x90   :  { %s1161_s17 = scalar_lea.vmem %s116_s19, 1024  ;;  %p1166_p12 = scmp.lt.s32.totalorder %s116_s19, %s116_s19 }
  0x91   :  { %p1162_p11 = scmp.ne.s32.totalorder %s116_s19, %s1161_s17  ;;  %p1167_p13 = scmp.lt.s32.totalorder %s1161_s17, %s1161_s17 }
  0x93   :  { %p1168_p0 = por %p1167_p13, %p1166_p12 }
  0x95   :  { %p1169_p1 = pnand %p1168_p0, %p1162_p11 }
  0x97   :  { %1172 = shalt.err (!%p1169_p1)
}
  0x98   :  { %121 = dma.hbm_to_vmem [thread:$0]  %s1479_s8, 1024, %s116_s19, [#allocation15], %s1209_s21, %s1209_s21, %s1210_s22  }
  0x99   :  { %1195 = dma.done.wait [#allocation3], 128  }
  0x9a   :  { %1196 = vsyncadd [#allocation3], 4294967168 }
  0x9b   :  { %1197 = dma.done.wait [#allocation6], 272  }
  0x9c   :  { %1198 = vsyncadd [#allocation6], 4294967024 }
  0x9d   :  { %1199 = dma.done.wait [#allocation9], 1040  }
  0x9e   :  { %1200 = vsyncadd [#allocation9], 4294966256 }
  0x9f   :  { %1201 = dma.done.wait [#allocation12], 1040  }
  0xa0   :  { %1202 = vsyncadd [#allocation12], 4294966256 }
  0xa1   :  { %1203 = dma.done.wait [#allocation15], 2048  }
  0xa2   :  { %1204 = vsyncadd [#allocation15], 4294965248  ;;  %v1218_v0 = vmov 0.0   ;;  %vm1219_vm0 = vmmov 0   ;;  %v932_v1 = vld [vmem:[#allocation5] sm:$0xff]   ;;  %v933_v2 = vld [vmem:[#allocation5 + $0x8] sm:$0xff]  }
  0xa3   :  { %826 = vmatprep.subr.bf16.mxu0 %v1218_v0  ;;  %830 = vmatprep.mubr.msk.bf16.mxu0 %vm1219_vm0, %v1218_v0  ;;  %v935_v3 = vld [vmem:[#allocation8] sm:$0xff]   ;;  %v936_v5 = vld [vmem:[#allocation8 + $0x8] sm:$0xff]   ;;  %vm180_vm1 = vcmask 261120   ;;  %v937_v6 = vld [vmem:[#allocation8 + $0x10] sm:$0xff]   ;;  %v1220_v26 = vmov 0   ;;  %s1222_s8 = smov [#allocation17]  }
  0xa4   :  { %834 = vmatprep.subr.bf16.mxu1 %v1218_v0  ;;  %850 = vmatprep.mubr.msk.bf16.mxu1 %vm1219_vm0, %v1218_v0  ;;  %v934_v4 = vld [vmem:[#allocation2] sm:$0xff]   ;;  %v938_v7 = vld [vmem:[#allocation8 + $0x18] sm:$0xff]   ;;  %v941_v10 = vld [vmem:[#allocation8 + $0x30] sm:$0xff]   ;;  %s728_s21 = sshll.u32 %s1222_s8, 4  ;;  %s729_s21 = int_to_ptr.vmem [resolvable:$true] %s728_s21 }
  0xa5   :  { %827 = vmatpush3.bf16.msra.mxu0 %v932_v1  ;;  %835 = vmatpush3.bf16.msra.mxu1 %v935_v3  ;;  %v939_v8 = vld [vmem:[#allocation8 + $0x20] sm:$0xff]   ;;  %v940_v9 = vld [vmem:[#allocation8 + $0x28] sm:$0xff]   ;;  %v942_v11 = vld [vmem:[#allocation8 + $0x38] sm:$0xff]   ;;  %s1173_s22 = scalar_lea.vmem %s729_s21, 768  ;;  %p1178_p3 = scmp.lt.s32.totalorder %s729_s21, %s729_s21 }
  0xa6   :  { %828 = vmatprep.subr.bf16.mxu0 %v1218_v0  ;;  %836 = vmatprep.subr.bf16.mxu1 %v1218_v0  ;;  %v943_v12 = vld [vmem:[#allocation11] sm:$0xff]   ;;  %v944_v13 = vld [vmem:[#allocation11 + $0x8] sm:$0xff]   ;;  %v945_v14 = vld [vmem:[#allocation11 + $0x10] sm:$0xff]   ;;  %p1174_p2 = scmp.ne.s32.totalorder %s729_s21, %s1173_s22  ;;  %p1179_p4 = scmp.lt.s32.totalorder %s1173_s22, %s1173_s22 }
  0xa7   :  { %v946_v15 = vld [vmem:[#allocation11 + $0x18] sm:$0xff]   ;;  %v947_v16 = vld [vmem:[#allocation11 + $0x20] sm:$0xff]   ;;  %v948_v17 = vld [vmem:[#allocation11 + $0x28] sm:$0xff]  }
  0xa8   :  { %v744_v18 = vld [vmem:[#allocation7] ss:$0 sm:$0xff]  ;;  %v949_v28 = vld [vmem:[#allocation11 + $0x30] sm:$0xff]   ;;  %v749_v30 = vld [vmem:[#allocation10] ss:$0 sm:$0xff]  ;;  %p1180_p5 = por %p1179_p4, %p1178_p3 }
  0xa9   :  { %829 = vmatpush3.bf16.msra.mxu0 %v933_v2  ;;  %837 = vmatpush3.bf16.msra.mxu1 %v936_v5  ;;  %v950_v29 = vld [vmem:[#allocation11 + $0x38] sm:$0xff]   ;;  %v758_v39 = vld [vmem:[#allocation13] ss:$0 sm:$0xff]  ;;  %v951_v48 = vld [vmem:[#allocation14] sm:$0xff]  }
  0xaa   :  { %854 = vmatprep.subr.bf16.mxu0 %v1218_v0  ;;  %838 = vmatprep.subr.bf16.mxu1 %v1218_v0  ;;  %v952_v49 = vld [vmem:[#allocation14 + $0x8] sm:$0xff]   ;;  %v953_v50 = vld [vmem:[#allocation14 + $0x10] sm:$0xff]   ;;  %v954_v51 = vld [vmem:[#allocation14 + $0x18] sm:$0xff]   ;;  %p1181_p6 = pnand %p1180_p5, %p1174_p2 }
  0xab   :  { %v955_v52 = vld [vmem:[#allocation14 + $0x20] sm:$0xff]   ;;  %v956_v53 = vld [vmem:[#allocation14 + $0x28] sm:$0xff]   ;;  %v957_v54 = vld [vmem:[#allocation14 + $0x30] sm:$0xff]  }
  0xac   :  { %831 = vmatmul.mubr.msk.bf16.vlgmr.msra.gmra.mrb[0].mxu0 %vm180_vm1, %v934_v4  ;;  %v958_v55 = vld [vmem:[#allocation14 + $0x38] sm:$0xff]  }
  0xad   :  { %870 = vmatprep.mubr.msk.bf16.mxu0 %vm1219_vm0, %v1218_v0  ;;  %839 = vmatpush3.bf16.msra.mxu1 %v937_v6 }
  0xae   :  { %840 = vmatprep.subr.bf16.mxu1 %v1218_v0  ;;  %855 = vmatpush3.bf16.msra.mxu0 %v943_v12  ;;  %v587_v12 = vlaneseq }
  0xaf   :  { %856 = vmatprep.subr.bf16.mxu0 %v1218_v0 }
  0xb1   :  { %841 = vmatpush3.bf16.msra.mxu1 %v938_v7 }
  0xb2   :  { %842 = vmatprep.subr.bf16.mxu1 %v1218_v0  ;;  %857 = vmatpush3.bf16.msra.mxu0 %v944_v13  ;;  %v588_v13 = vand.u32 127, %v587_v12 }
  0xb3   :  { %858 = vmatprep.subr.bf16.mxu0 %v1218_v0 }
  0xb4   :  { %vm589_vm6 = vcmp.lt.s32.totalorder %v588_v13, 8 }
  0xb5   :  { %843 = vmatpush3.bf16.msra.mxu1 %v939_v8 }
  0xb6   :  { %844 = vmatprep.subr.bf16.mxu1 %v1218_v0  ;;  %859 = vmatpush3.bf16.msra.mxu0 %v945_v14 }
  0xb7   :  { %860 = vmatprep.subr.bf16.mxu0 %v1218_v0 }
  0xb9   :  { %845 = vmatpush3.bf16.msra.mxu1 %v940_v9 }
  0xba   :  { %846 = vmatprep.subr.bf16.mxu1 %v1218_v0  ;;  %861 = vmatpush3.bf16.msra.mxu0 %v946_v15 }
  0xbb   :  { %862 = vmatprep.subr.bf16.mxu0 %v1218_v0 }
  0xbd   :  { %847 = vmatpush3.bf16.msra.mxu1 %v941_v10 }
  0xbe   :  { %848 = vmatprep.subr.bf16.mxu1 %v1218_v0  ;;  %863 = vmatpush3.bf16.msra.mxu0 %v947_v16 }
  0xbf   :  { %864 = vmatprep.subr.bf16.mxu0 %v1218_v0 }
  0xc1   :  { %849 = vmatpush3.bf16.msra.mxu1 %v942_v11 }
  0xc2   :  { %874 = vmatprep.subr.bf16.mxu1 %v1218_v0  ;;  %865 = vmatpush3.bf16.msra.mxu0 %v948_v17 }
  0xc3   :  { %866 = vmatprep.subr.bf16.mxu0 %v1218_v0 }
  0xc6   :  { %867 = vmatpush3.bf16.msra.mxu0 %v949_v28  ;;  %v965_v28 = vld [vmem:[#allocation16 + $0x30] sm:$0xff]  }
  0xc7   :  { %868 = vmatprep.subr.bf16.mxu0 %v1218_v0 }
  0xca   :  { %869 = vmatpush3.bf16.msra.mxu0 %v950_v29  ;;  %v596_v29 = vcvt.s32.f32 %v588_v13 }
  0xcb   :  { %894 = vmatprep.subr.bf16.mxu0 %v1218_v0 }
 0x17f   :  { %v218_v19 = vpop.f32.mrb[0].mxu0 }
 0x180   :  { %v832_v20 = vpop.f32.mrb[1].mxu0  ;;  %v219_v22 = vadd.f32 %v744_v18, %v218_v19 }
 0x181   :  { %v221_v21 = vpop.f32.mrb[2].mxu0 }
 0x182   :  { %v222_v23 = vadd.f32 %v744_v18, %v221_v21  ;;  %v833_v24 = vpop.f32.mrb[3].mxu0 }
 0x183   :  { %v961_v24 = vld [vmem:[#allocation16 + $0x10] sm:$0xff]  }
 0x184   :  { %v225_v25 = vpack.c.bf16 %v222_v23, %v219_v22  ;;  %v959_v22 = vld [vmem:[#allocation16] sm:$0xff]   ;;  %v960_v23 = vld [vmem:[#allocation16 + $0x8] sm:$0xff]  }
 0x186   :  { %v226_v27 = vmax.bf16 %v1220_v26, %v225_v25  ;;  %v962_v25 = vld [vmem:[#allocation16 + $0x18] sm:$0xff]  }
 0x188   :  { %851 = vmatmul.mubr.bf16.vlgmr.msra.gmra.mrb[0].mxu1 %v226_v27  ;;  %v964_v27 = vld [vmem:[#allocation16 + $0x28] sm:$0xff]  }
 0x189   :  { %890 = vmatprep.mubr.msk.bf16.mxu1 %vm1219_vm0, %v1218_v0  ;;  %875 = vmatpush3.bf16.msra.mxu1 %v951_v48 }
 0x18a   :  { %876 = vmatprep.subr.bf16.mxu1 %v1218_v0 }
 0x18d   :  { %877 = vmatpush3.bf16.msra.mxu1 %v952_v49 }
 0x18e   :  { %878 = vmatprep.subr.bf16.mxu1 %v1218_v0 }
 0x191   :  { %879 = vmatpush3.bf16.msra.mxu1 %v953_v50 }
 0x192   :  { %880 = vmatprep.subr.bf16.mxu1 %v1218_v0 }
 0x195   :  { %881 = vmatpush3.bf16.msra.mxu1 %v954_v51 }
 0x196   :  { %882 = vmatprep.subr.bf16.mxu1 %v1218_v0 }
 0x199   :  { %883 = vmatpush3.bf16.msra.mxu1 %v955_v52 }
 0x19a   :  { %884 = vmatprep.subr.bf16.mxu1 %v1218_v0 }
 0x19d   :  { %885 = vmatpush3.bf16.msra.mxu1 %v956_v53 }
 0x19e   :  { %886 = vmatprep.subr.bf16.mxu1 %v1218_v0 }
 0x1a1   :  { %887 = vmatpush3.bf16.msra.mxu1 %v957_v54 }
 0x1a2   :  { %888 = vmatprep.subr.bf16.mxu1 %v1218_v0 }
 0x1a5   :  { %889 = vmatpush3.bf16.msra.mxu1 %v958_v55 }
 0x25b   :  { %v332_v31 = vpop.f32.mrb[0].mxu1 }
 0x25c   :  { %v852_v32 = vpop.f32.mrb[1].mxu1  ;;  %v333_v34 = vadd.f32 %v749_v30, %v332_v31 }
 0x25d   :  { %v335_v33 = vpop.f32.mrb[2].mxu1 }
 0x25e   :  { %v336_v35 = vadd.f32 %v749_v30, %v335_v33  ;;  %v853_v36 = vpop.f32.mrb[3].mxu1 }
 0x260   :  { %v339_v37 = vpack.c.bf16 %v336_v35, %v333_v34  ;;  %v966_v34 = vld [vmem:[#allocation16 + $0x38] sm:$0xff]  }
 0x262   :  { %v340_v38 = vmax.bf16 %v1220_v26, %v339_v37  ;;  %v963_v26 = vld [vmem:[#allocation16 + $0x20] sm:$0xff]   ;;  %v1221_v37 = vmov 1.0|1.0  }
 0x264   :  { %871 = vmatmul.mubr.bf16.vlgmr.msra.gmra.mrb[4].mxu0 %v340_v38 }
 0x265   :  { %910 = vmatprep.mubr.msk.bf16.mxu0 %vm1219_vm0, %v1218_v0  ;;  %895 = vmatpush3.bf16.msra.mxu0 %v959_v22 }
 0x266   :  { %896 = vmatprep.subr.bf16.mxu0 %v1218_v0 }
 0x269   :  { %897 = vmatpush3.bf16.msra.mxu0 %v960_v23 }
 0x26a   :  { %898 = vmatprep.subr.bf16.mxu0 %v1218_v0 }
 0x26d   :  { %899 = vmatpush3.bf16.msra.mxu0 %v961_v24 }
 0x26e   :  { %900 = vmatprep.subr.bf16.mxu0 %v1218_v0 }
 0x271   :  { %901 = vmatpush3.bf16.msra.mxu0 %v962_v25 }
 0x272   :  { %902 = vmatprep.subr.bf16.mxu0 %v1218_v0 }
 0x275   :  { %903 = vmatpush3.bf16.msra.mxu0 %v963_v26 }
 0x276   :  { %904 = vmatprep.subr.bf16.mxu0 %v1218_v0 }
 0x279   :  { %905 = vmatpush3.bf16.msra.mxu0 %v964_v27 }
 0x27a   :  { %906 = vmatprep.subr.bf16.mxu0 %v1218_v0 }
 0x27d   :  { %907 = vmatpush3.bf16.msra.mxu0 %v965_v28 }
 0x27e   :  { %908 = vmatprep.subr.bf16.mxu0 %v1218_v0 }
 0x281   :  { %909 = vmatpush3.bf16.msra.mxu0 %v966_v34 }
 0x337   :  { %v446_v40 = vpop.f32.mrb[4].mxu0 }
 0x338   :  { %v447_v41 = vadd.f32 %v758_v39, %v446_v40  ;;  %v872_v42 = vpop.f32.mrb[5].mxu0 }
 0x339   :  { %v449_v43 = vpop.f32.mrb[6].mxu0 }
 0x33a   :  { %v450_v44 = vadd.f32 %v758_v39, %v449_v43  ;;  %v873_v45 = vpop.f32.mrb[7].mxu0  ;;  %v453_v46 = vmul.f32 %v447_v41, %v447_v41 }
 0x33c   :  { %455 = vadd.xlane.f32.xlu0 %v453_v46  ;;  %v454_v47 = vmul.f32 %v450_v44, %v450_v44 }
 0x340   :  { %457 = vadd.xlane.f32.xlu0 %v454_v47 }
 0x3c9   :  { %v456_v56 = vpop.xlane.xlu0 %455 }
 0x3ca   :  { %967 = vrsqrt.f32 %v456_v56  ;;  %vm461_vm2 = vcmp.eq.f32.partialorder %v456_v56, inf  ;;  %v464_v60 = vand.u32 2147483648, %v456_v56  ;;  %vm463_vm3 = vcmp.eq.f32.partialorder %v456_v56, 0.0 }
 0x3cd   :  { %v458_v57 = vpop.xlane.xlu0 %457 }
 0x3ce   :  { %969 = vrsqrt.f32 %v458_v57  ;;  %vm468_vm4 = vcmp.eq.f32.partialorder %v458_v57, inf  ;;  %v471_v3 = vand.u32 2147483648, %v458_v57  ;;  %vm470_vm5 = vcmp.eq.f32.partialorder %v458_v57, 0.0 }
 0x3d4   :  { %v968_v58 = vpop.eup %967 }
 0x3d5   :  { %v460_v59 = vmul.f32 %v968_v58, %v456_v56 }
 0x3d7   :  { %v462_v61 = vsel %vm461_vm2, %v456_v56, %v460_v59 }
 0x3d8   :  { %v970_v62 = vpop.eup %969  ;;  %v465_v63 = vsel %vm463_vm3, %v464_v60, %v462_v61 }
 0x3d9   :  { %v473_v1 = vadd.f32 1e-05, %v465_v63  ;;  %v467_v2 = vmul.f32 %v970_v62, %v458_v57 }
 0x3db   :  { %971 = vrcp.f32 %v473_v1  ;;  %v469_v4 = vsel %vm468_vm4, %v458_v57, %v467_v2 }
 0x3dc   :  { %v472_v5 = vsel %vm470_vm5, %v471_v3, %v469_v4 }
 0x3dd   :  { %v474_v6 = vadd.f32 1e-05, %v472_v5 }
 0x3df   :  { %973 = vrcp.f32 %v474_v6 }
 0x3e5   :  { %v972_v7 = vpop.eup %971 }
 0x3e6   :  { %v477_v8 = vmul.f32 %v972_v7, %v447_v41 }
 0x3e8   :  { %717 = vst [vmem:[#allocation17] sm:$0xff] %v477_v8 }
 0x3e9   :  { %v974_v9 = vpop.eup %973 }
 0x3ea   :  { %v478_v10 = vmul.f32 %v974_v9, %v450_v44 }
 0x3ec   :  { %v479_v11 = vpack.c.bf16 %v478_v10, %v477_v8  ;;  %720 = vst [vmem:[#allocation17 + $0x18] sm:$0xff] %v478_v10 }
 0x3ee   :  { %891 = vmatmul.mubr.bf16.vlgmr.msra.gmra.mrb[4].mxu1 %v479_v11 }
 0x4c1   :  { %v578_v14 = vpop.f32.mrb[4].mxu1 }
 0x4c2   :  { %v585_v15 = vmul.f32 10.0, %v578_v14  ;;  %v892_v16 = vpop.f32.mrb[5].mxu1 }
 0x4c3   :  { %v581_v17 = vpop.f32.mrb[6].mxu1 }
 0x4c4   :  { %v586_v18 = vmul.f32 10.0, %v581_v17  ;;  %v893_v19 = vpop.f32.mrb[7].mxu1  ;;  %v590_v20 = vsel %vm589_vm6, %v585_v15, -1e+30 }
 0x4c5   :  { %592 = vmax.xlane.f32.xlu1 %v590_v20 }
 0x4c6   :  { %v591_v21 = vsel %vm589_vm6, %v586_v18, -1e+30 }
 0x4c9   :  { %594 = vmax.xlane.f32.xlu1 %v591_v21 }
 0x552   :  { %v593_v30 = vpop.xlane.xlu1 %592 }
 0x553   :  { %vm597_vm7 = vcmp.eq.f32.partialorder %v590_v20, %v593_v30 }
 0x554   :  { %v599_v31 = vsel %vm597_vm7, %v596_v29, 128.0 }
 0x555   :  { %601 = vmin.xlane.f32.xlu0 %v599_v31 }
 0x556   :  { %v595_v32 = vpop.xlane.xlu1 %594 }
 0x557   :  { %vm598_vm8 = vcmp.eq.f32.partialorder %v591_v21, %v595_v32 }
 0x558   :  { %v600_v33 = vsel %vm598_vm8, %v596_v29, 128.0 }
 0x559   :  { %603 = vmin.xlane.f32.xlu1 %v600_v33 }
 0x5e2   :  { %v602_v35 = vpop.xlane.xlu0 %601 }
 0x5e3   :  { %719 = vst [vmem:[#allocation17 + $0x10] sm:$0xff] %v602_v35  ;;  %vm605_vm9 = vcmp.eq.f32.partialorder %v596_v29, %v602_v35 }
 0x5e6   :  { %v604_v36 = vpop.xlane.xlu1 %603 }
 0x5e7   :  { %vm606_vm10 = vcmp.eq.f32.partialorder %v596_v29, %v604_v36  ;;  %722 = vst [vmem:[#allocation17 + $0x28] sm:$0xff] %v604_v36 }
 0x5e8   :  { %vm785_vm11 = vmpackc.low %vm606_vm10, %vm605_vm9 }
 0x5e9   :  { %911 = vmatmul.mubr.msk.bf16.vlgmr.msra.gmra.mrb[8].mxu0 %vm785_vm11, %v1221_v37 }
 0x6bc   :  { %v710_v0 = vpop.f32.mrb[8].mxu0 }
 0x6bd   :  { %718 = vst [vmem:[#allocation17 + $0x8] sm:$0xff] %v710_v0  ;;  %v912_v38 = vpop.f32.mrb[9].mxu0 }
 0x6be   :  { %v713_v39 = vpop.f32.mrb[10].mxu0 }
 0x6bf   :  { %721 = vst [vmem:[#allocation17 + $0x20] sm:$0xff] %v713_v39  ;;  %v913_v40 = vpop.f32.mrb[11].mxu0 }
 0x6c0   :  { %1184 = shalt.err (!%p1181_p6)
}
 0x6c1   :  { %s1185_s28 = scalar_lea.hbm %s1480_s9, 768 }
 0x6c2   :  { %p1186_p7 = scmp.ne.s32.totalorder %s1480_s9, %s1185_s28  ;;  %p1189_p8 = scmp.lt.u32.totalorder %s1185_s28, %s1480_s9 }
 0x6c4   :  { %p1191_p9 = pnand %p1189_p8, %p1186_p7 }
 0x6c6   :  { %1194 = shalt.err (!%p1191_p9)
}
 0x6c7   :  { %s1223_s1 = smov 384   ;;  %s1224_s10 = smov 24  }
 0x6c8   :  { %734 = dma.vmem_to_hbm [thread:$0]  %s729_s21, 768, %s1480_s9, [#allocation4], %s1223_s1, %s1223_s1, %s1224_s10  }
 0x6c9   :  { %1205 = dma.done.wait [#allocation4], 768  }
 0x6ca   :  { %1206 = vsyncadd [#allocation4], 4294966528 }
 0x6cb   :  { %738 = vsyncpa [#allocation3], 1 }
 0x6cc   :  { %739 = vsyncpa [#allocation6], 1 }
 0x6cd   :  { %740 = vsyncpa [#allocation9], 1 }
 0x6ce   :  { %741 = vsyncpa [#allocation12], 1 }
 0x6cf   :  { %742 = vsyncpa [#allocation15], 1 }
 0x6d0   :  { %743 = vsyncpa [#allocation4], 1 }

// kernel: tpu_custom_call.1
= control target key start
LH: loop header
LB: loop body
LE: loop exit
PB: predicated region body
PF: predicated region fallthrough
CT: control target
= control target key end

     0   :  { %14 = vsyncpa [#allocation3], 0  ;;  %s1471_s0 = inlined_call_operand.hbm [shape: bf16[16,32], index: 0, kind: input, shape index: {}]   ;;  %s1472_s1 = inlined_call_operand.hbm [shape: bf16[32,128], index: 1, kind: input, shape index: {}]   ;;  %s1473_s2 = inlined_call_operand.hbm [shape: f32[1,128], index: 2, kind: input, shape index: {}]   ;;  %s1474_s3 = inlined_call_operand.hbm [shape: bf16[128,128], index: 3, kind: input, shape index: {}]   ;;  %s1475_s4 = inlined_call_operand.hbm [shape: f32[1,128], index: 4, kind: input, shape index: {}]   ;;  %s1476_s5 = inlined_call_operand.hbm [shape: bf16[128,128], index: 5, kind: input, shape index: {}]   ;;  %s1477_s6 = inlined_call_operand.hbm [shape: f32[1,128], index: 6, kind: input, shape index: {}]   ;;  %s1478_s7 = inlined_call_operand.hbm [shape: bf16[128,128], index: 7, kind: input, shape index: {}]   ;;  %s1479_s8 = inlined_call_operand.hbm [shape: bf16[128,128], index: 8, kind: input, shape index: {}]   ;;  %s1480_s9 = inlined_call_operand.hbm [shape: f32[16,384], index: 9, kind: output, shape index: {}]  }
   0x1   :  { %15 = vsyncpa [#allocation6], 0 }
   0x2   :  { %16 = vsyncpa [#allocation9], 0 }
   0x3   :  { %17 = vsyncpa [#allocation12], 0 }
   0x4   :  { %18 = vsyncpa [#allocation15], 0 }
   0x5   :  { %19 = vsyncpa [#allocation4], 0  ;;  %s1207_s30 = smov [#allocation5]   ;;  %s1208_s11 = smov [#allocation8]  }
   0x6   :  { %s37_s10 = sshll.u32 %s1207_s30, 4  ;;  %s59_s12 = sshll.u32 %s1208_s11, 4  ;;  %s38_s10 = int_to_ptr.vmem [resolvable:$true] %s37_s10  ;;  %s1275_s12 = int_to_ptr.vmem [resolvable:$true] %s59_s12 }
   0x7   :  { %s975_s15 = scalar_lea.hbm %s1472_s1, 256 }
   0x8   :  { %p976_p0 = scmp.ne.s32.totalorder %s1472_s1, %s975_s15  ;;  %p979_p1 = scmp.lt.u32.totalorder %s975_s15, %s1472_s1 }
   0xa   :  { %p981_p2 = pnand %p979_p1, %p976_p0 }
   0xc   :  { %984 = shalt.err (!%p981_p2)
}
   0xd   :  { %s985_s20 = scalar_lea.vmem %s38_s10, 256  ;;  %p990_p4 = scmp.lt.s32.totalorder %s38_s10, %s38_s10 }
   0xe   :  { %p986_p3 = scmp.ne.s32.totalorder %s38_s10, %s985_s20  ;;  %p991_p5 = scmp.lt.s32.totalorder %s985_s20, %s985_s20 }
  0x10   :  { %p992_p6 = por %p991_p5, %p990_p4 }
  0x12   :  { %p993_p7 = pnand %p992_p6, %p986_p3 }
  0x14   :  { %996 = shalt.err (!%p993_p7)
}
  0x15   :  { %s1209_s21 = smov 64   ;;  %s1210_s22 = smov 4  }
  0x16   :  { %43 = dma.hbm_to_vmem [thread:$0]  %s1472_s1, 256, %s38_s10, [#allocation6], %s1209_s21, %s1209_s21, %s1210_s22  }
  0x17   :  { %s997_s27 = scalar_lea.hbm %s1474_s3, 1024 }
  0x18   :  { %p998_p8 = scmp.ne.s32.totalorder %s1474_s3, %s997_s27  ;;  %p1001_p9 = scmp.lt.u32.totalorder %s997_s27, %s1474_s3 }
  0x1a   :  { %p1003_p10 = pnand %p1001_p9, %p998_p8 }
  0x1c   :  { %1006 = shalt.err (!%p1003_p10)
}
  0x1d   :  { %s1007_s13 = scalar_lea.vmem %s1275_s12, 1024  ;;  %p1012_p12 = scmp.lt.s32.totalorder %s1275_s12, %s1275_s12 }
  0x1e   :  { %p1008_p11 = scmp.ne.s32.totalorder %s1275_s12, %s1007_s13  ;;  %p1013_p13 = scmp.lt.s32.totalorder %s1007_s13, %s1007_s13 }
  0x20   :  { %p1014_p0 = por %p1013_p13, %p1012_p12 }
  0x22   :  { %p1015_p1 = pnand %p1014_p0, %p1008_p11 }
  0x24   :  { %1018 = shalt.err (!%p1015_p1)
}
  0x25   :  { %65 = dma.hbm_to_vmem [thread:$0]  %s1474_s3, 1024, %s1275_s12, [#allocation9], %s1209_s21, %s1209_s21, %s1210_s22  }
  0x26   :  { %s1211_s14 = smov [#allocation11]   ;;  %s1212_s16 = smov [#allocation14]  }
  0x27   :  { %s81_s15 = sshll.u32 %s1211_s14, 4  ;;  %s103_s17 = sshll.u32 %s1212_s16, 4  ;;  %s82_s15 = int_to_ptr.vmem [resolvable:$true] %s81_s15  ;;  %s1312_s17 = int_to_ptr.vmem [resolvable:$true] %s103_s17 }
  0x28   :  { %s1019_s20 = scalar_lea.hbm %s1476_s5, 1024 }
  0x29   :  { %p1020_p2 = scmp.ne.s32.totalorder %s1476_s5, %s1019_s20  ;;  %p1023_p3 = scmp.lt.u32.totalorder %s1019_s20, %s1476_s5 }
  0x2b   :  { %p1025_p4 = pnand %p1023_p3, %p1020_p2 }
  0x2d   :  { %1028 = shalt.err (!%p1025_p4)
}
  0x2e   :  { %s1029_s3 = scalar_lea.vmem %s82_s15, 1024  ;;  %p1034_p6 = scmp.lt.s32.totalorder %s82_s15, %s82_s15 }
  0x2f   :  { %p1030_p5 = scmp.ne.s32.totalorder %s82_s15, %s1029_s3  ;;  %p1035_p7 = scmp.lt.s32.totalorder %s1029_s3, %s1029_s3 }
  0x31   :  { %p1036_p8 = por %p1035_p7, %p1034_p6 }
  0x33   :  { %p1037_p9 = pnand %p1036_p8, %p1030_p5 }
  0x35   :  { %1040 = shalt.err (!%p1037_p9)
}
  0x36   :  { %87 = dma.hbm_to_vmem [thread:$0]  %s1476_s5, 1024, %s82_s15, [#allocation12], %s1209_s21, %s1209_s21, %s1210_s22  }
  0x37   :  { %s1041_s30 = scalar_lea.hbm %s1478_s7, 1024 }
  0x38   :  { %p1042_p10 = scmp.ne.s32.totalorder %s1478_s7, %s1041_s30  ;;  %p1045_p11 = scmp.lt.u32.totalorder %s1041_s30, %s1478_s7 }
  0x3a   :  { %p1047_p12 = pnand %p1045_p11, %p1042_p10 }
  0x3c   :  { %1050 = shalt.err (!%p1047_p12)
}
  0x3d   :  { %s1051_s14 = scalar_lea.vmem %s1312_s17, 1024  ;;  %p1056_p0 = scmp.lt.s32.totalorder %s1312_s17, %s1312_s17 }
  0x3e   :  { %p1052_p13 = scmp.ne.s32.totalorder %s1312_s17, %s1051_s14  ;;  %p1057_p1 = scmp.lt.s32.totalorder %s1051_s14, %s1051_s14 }
  0x40   :  { %p1058_p2 = por %p1057_p1, %p1056_p0 }
  0x42   :  { %p1059_p3 = pnand %p1058_p2, %p1052_p13 }
  0x44   :  { %1062 = shalt.err (!%p1059_p3)
}
  0x45   :  { %109 = dma.hbm_to_vmem [thread:$0]  %s1478_s7, 1024, %s1312_s17, [#allocation15], %s1209_s21, %s1209_s21, %s1210_s22  }
  0x46   :  { %s1213_s16 = smov [#allocation2]   ;;  %s1214_s19 = smov [#allocation7]  }
  0x47   :  { %s25_s18 = sshll.u32 %s1213_s16, 4  ;;  %s50_s20 = sshll.u32 %s1214_s19, 4  ;;  %s26_s18 = int_to_ptr.vmem [resolvable:$true] %s25_s18  ;;  %s51_s20 = int_to_ptr.vmem [resolvable:$true] %s50_s20 }
  0x48   :  { %s1063_s25 = scalar_lea.hbm %s1471_s0, 128 }
  0x49   :  { %p1064_p4 = scmp.ne.s32.totalorder %s1471_s0, %s1063_s25  ;;  %p1067_p5 = scmp.lt.u32.totalorder %s1063_s25, %s1471_s0 }
  0x4b   :  { %p1069_p6 = pnand %p1067_p5, %p1064_p4 }
  0x4d   :  { %1072 = shalt.err (!%p1069_p6)
}
  0x4e   :  { %s1073_s7 = scalar_lea.vmem %s26_s18, 128  ;;  %p1078_p8 = scmp.lt.s32.totalorder %s26_s18, %s26_s18 }
  0x4f   :  { %p1074_p7 = scmp.ne.s32.totalorder %s26_s18, %s1073_s7  ;;  %p1079_p9 = scmp.lt.s32.totalorder %s1073_s7, %s1073_s7 }
  0x51   :  { %p1080_p10 = por %p1079_p9, %p1078_p8 }
  0x53   :  { %p1081_p11 = pnand %p1080_p10, %p1074_p7 }
  0x55   :  { %1084 = shalt.err (!%p1081_p11)
}
  0x56   :  { %31 = dma.hbm_to_vmem [thread:$0]  %s1471_s0, 128, %s26_s18, [#allocation3], %s1209_s21, %s1209_s21, %s1210_s22  }
  0x57   :  { %s1085_s11 = scalar_lea.hbm %s1473_s2, 16 }
  0x58   :  { %p1086_p12 = scmp.ne.s32.totalorder %s1473_s2, %s1085_s11  ;;  %p1089_p13 = scmp.lt.u32.totalorder %s1085_s11, %s1473_s2 }
  0x5a   :  { %p1091_p0 = pnand %p1089_p13, %p1086_p12 }
  0x5c   :  { %1094 = shalt.err (!%p1091_p0)
}
  0x5d   :  { %s1095_s5 = scalar_lea.vmem %s51_s20, 16  ;;  %s1099_s15 = scalar_lea.vmem %s51_s20, 32 }
  0x5e   :  { %p1096_p1 = scmp.ne.s32.totalorder %s51_s20, %s1095_s5  ;;  %p1100_p2 = scmp.lt.s32.totalorder %s51_s20, %s51_s20 }
  0x5f   :  { %p1101_p3 = scmp.lt.s32.totalorder %s1099_s15, %s1095_s5 }
  0x61   :  { %p1102_p4 = por %p1101_p3, %p1100_p2 }
  0x63   :  { %p1103_p5 = pnand %p1102_p4, %p1096_p1 }
  0x65   :  { %1106 = shalt.err (!%p1103_p5)
}
  0x66   :  { %53 = dma.hbm_to_vmem [thread:$0]  %s1473_s2, 16, %s51_s20, [#allocation6]  }
  0x67   :  { %s1215_s18 = smov [#allocation10]   ;;  %s1216_s23 = smov [#allocation13]  }
  0x68   :  { %s72_s19 = sshll.u32 %s1215_s18, 4  ;;  %s94_s24 = sshll.u32 %s1216_s23, 4  ;;  %s73_s19 = int_to_ptr.vmem [resolvable:$true] %s72_s19  ;;  %s95_s24 = int_to_ptr.vmem [resolvable:$true] %s94_s24 }
  0x69   :  { %s1107_s3 = scalar_lea.hbm %s1475_s4, 16 }
  0x6a   :  { %p1108_p6 = scmp.ne.s32.totalorder %s1475_s4, %s1107_s3  ;;  %p1111_p7 = scmp.lt.u32.totalorder %s1107_s3, %s1475_s4 }
  0x6c   :  { %p1113_p8 = pnand %p1111_p7, %p1108_p6 }
  0x6e   :  { %1116 = shalt.err (!%p1113_p8)
}
  0x6f   :  { %s1117_s2 = scalar_lea.vmem %s73_s19, 16  ;;  %s1121_s20 = scalar_lea.vmem %s73_s19, 32 }
  0x70   :  { %p1118_p9 = scmp.ne.s32.totalorder %s73_s19, %s1117_s2  ;;  %p1122_p10 = scmp.lt.s32.totalorder %s73_s19, %s73_s19 }
  0x71   :  { %p1123_p11 = scmp.lt.s32.totalorder %s1121_s20, %s1117_s2 }
  0x73   :  { %p1124_p12 = por %p1123_p11, %p1122_p10 }
  0x75   :  { %p1125_p13 = pnand %p1124_p12, %p1118_p9 }
  0x77   :  { %1128 = shalt.err (!%p1125_p13)
}
  0x78   :  { %75 = dma.hbm_to_vmem [thread:$0]  %s1475_s4, 16, %s73_s19, [#allocation9]  }
  0x79   :  { %s1129_s13 = scalar_lea.hbm %s1477_s6, 16 }
  0x7a   :  { %p1130_p0 = scmp.ne.s32.totalorder %s1477_s6, %s1129_s13  ;;  %p1133_p1 = scmp.lt.u32.totalorder %s1129_s13, %s1477_s6 }
  0x7c   :  { %p1135_p2 = pnand %p1133_p1, %p1130_p0 }
  0x7e   :  { %1138 = shalt.err (!%p1135_p2)
}
  0x7f   :  { %s1139_s15 = scalar_lea.vmem %s95_s24, 16  ;;  %s1143_s0 = scalar_lea.vmem %s95_s24, 32 }
  0x80   :  { %p1140_p3 = scmp.ne.s32.totalorder %s95_s24, %s1139_s15  ;;  %p1144_p4 = scmp.lt.s32.totalorder %s95_s24, %s95_s24 }
  0x81   :  { %p1145_p5 = scmp.lt.s32.totalorder %s1143_s0, %s1139_s15 }
  0x83   :  { %p1146_p6 = por %p1145_p5, %p1144_p4 }
  0x85   :  { %p1147_p7 = pnand %p1146_p6, %p1140_p3 }
  0x87   :  { %1150 = shalt.err (!%p1147_p7)
}
  0x88   :  { %97 = dma.hbm_to_vmem [thread:$0]  %s1477_s6, 16, %s95_s24, [#allocation12]  }
  0x89   :  { %s1217_s18 = smov [#allocation16]   ;;  %s1151_s26 = scalar_lea.hbm %s1479_s8, 1024 }
  0x8a   :  { %s115_s19 = sshll.u32 %s1217_s18, 4  ;;  %p1152_p8 = scmp.ne.s32.totalorder %s1479_s8, %s1151_s26  ;;  %s116_s19 = int_to_ptr.vmem [resolvable:$true] %s115_s19 }
  0x8b   :  { %p1155_p9 = scmp.lt.u32.totalorder %s1151_s26, %s1479_s8 }
  0x8d   :  { %p1157_p10 = pnand %p1155_p9, %p1152_p8 }
  0x8f   :  { %1160 = shalt.err (!%p1157_p10)
}
  0x90   :  { %s1161_s17 = scalar_lea.vmem %s116_s19, 1024  ;;  %p1166_p12 = scmp.lt.s32.totalorder %s116_s19, %s116_s19 }
  0x91   :  { %p1162_p11 = scmp.ne.s32.totalorder %s116_s19, %s1161_s17  ;;  %p1167_p13 = scmp.lt.s32.totalorder %s1161_s17, %s1161_s17 }
  0x93   :  { %p1168_p0 = por %p1167_p13, %p1166_p12 }
  0x95   :  { %p1169_p1 = pnand %p1168_p0, %p1162_p11 }
  0x97   :  { %1172 = shalt.err (!%p1169_p1)
}
  0x98   :  { %121 = dma.hbm_to_vmem [thread:$0]  %s1479_s8, 1024, %s116_s19, [#allocation15], %s1209_s21, %s1209_s21, %s1210_s22  }
  0x99   :  { %1195 = dma.done.wait [#allocation3], 128  }
  0x9a   :  { %1196 = vsyncadd [#allocation3], 4294967168 }
  0x9b   :  { %1197 = dma.done.wait [#allocation6], 272  }
  0x9c   :  { %1198 = vsyncadd [#allocation6], 4294967024 }
  0x9d   :  { %1199 = dma.done.wait [#allocation9], 1040  }
  0x9e   :  { %1200 = vsyncadd [#allocation9], 4294966256 }
  0x9f   :  { %1201 = dma.done.wait [#allocation12], 1040  }
  0xa0   :  { %1202 = vsyncadd [#allocation12], 4294966256 }
  0xa1   :  { %1203 = dma.done.wait [#allocation15], 2048  }
  0xa2   :  { %1204 = vsyncadd [#allocation15], 4294965248  ;;  %v1218_v0 = vmov 0.0   ;;  %vm1219_vm0 = vmmov 0   ;;  %v932_v1 = vld [vmem:[#allocation5] sm:$0xff]   ;;  %v933_v2 = vld [vmem:[#allocation5 + $0x8] sm:$0xff]  }
  0xa3   :  { %826 = vmatprep.subr.bf16.mxu0 %v1218_v0  ;;  %830 = vmatprep.mubr.msk.bf16.mxu0 %vm1219_vm0, %v1218_v0  ;;  %v935_v3 = vld [vmem:[#allocation8] sm:$0xff]   ;;  %v936_v5 = vld [vmem:[#allocation8 + $0x8] sm:$0xff]   ;;  %vm180_vm1 = vcmask 261120   ;;  %v937_v6 = vld [vmem:[#allocation8 + $0x10] sm:$0xff]   ;;  %v1220_v26 = vmov 0   ;;  %s1222_s8 = smov [#allocation17]  }
  0xa4   :  { %834 = vmatprep.subr.bf16.mxu1 %v1218_v0  ;;  %850 = vmatprep.mubr.msk.bf16.mxu1 %vm1219_vm0, %v1218_v0  ;;  %v934_v4 = vld [vmem:[#allocation2] sm:$0xff]   ;;  %v938_v7 = vld [vmem:[#allocation8 + $0x18] sm:$0xff]   ;;  %v941_v10 = vld [vmem:[#allocation8 + $0x30] sm:$0xff]   ;;  %s728_s21 = sshll.u32 %s1222_s8, 4  ;;  %s729_s21 = int_to_ptr.vmem [resolvable:$true] %s728_s21 }
  0xa5   :  { %827 = vmatpush3.bf16.msra.mxu0 %v932_v1  ;;  %835 = vmatpush3.bf16.msra.mxu1 %v935_v3  ;;  %v939_v8 = vld [vmem:[#allocation8 + $0x20] sm:$0xff]   ;;  %v940_v9 = vld [vmem:[#allocation8 + $0x28] sm:$0xff]   ;;  %v942_v11 = vld [vmem:[#allocation8 + $0x38] sm:$0xff]   ;;  %s1173_s22 = scalar_lea.vmem %s729_s21, 768  ;;  %p1178_p3 = scmp.lt.s32.totalorder %s729_s21, %s729_s21 }
  0xa6   :  { %828 = vmatprep.subr.bf16.mxu0 %v1218_v0  ;;  %836 = vmatprep.subr.bf16.mxu1 %v1218_v0  ;;  %v943_v12 = vld [vmem:[#allocation11] sm:$0xff]   ;;  %v944_v13 = vld [vmem:[#allocation11 + $0x8] sm:$0xff]   ;;  %v945_v14 = vld [vmem:[#allocation11 + $0x10] sm:$0xff]   ;;  %p1174_p2 = scmp.ne.s32.totalorder %s729_s21, %s1173_s22  ;;  %p1179_p4 = scmp.lt.s32.totalorder %s1173_s22, %s1173_s22 }
  0xa7   :  { %v946_v15 = vld [vmem:[#allocation11 + $0x18] sm:$0xff]   ;;  %v947_v16 = vld [vmem:[#allocation11 + $0x20] sm:$0xff]   ;;  %v948_v17 = vld [vmem:[#allocation11 + $0x28] sm:$0xff]  }
  0xa8   :  { %v744_v18 = vld [vmem:[#allocation7] ss:$0 sm:$0xff]  ;;  %v949_v28 = vld [vmem:[#allocation11 + $0x30] sm:$0xff]   ;;  %v749_v30 = vld [vmem:[#allocation10] ss:$0 sm:$0xff]  ;;  %p1180_p5 = por %p1179_p4, %p1178_p3 }
  0xa9   :  { %829 = vmatpush3.bf16.msra.mxu0 %v933_v2  ;;  %837 = vmatpush3.bf16.msra.mxu1 %v936_v5  ;;  %v950_v29 = vld [vmem:[#allocation11 + $0x38] sm:$0xff]   ;;  %v758_v39 = vld [vmem:[#allocation13] ss:$0 sm:$0xff]  ;;  %v951_v48 = vld [vmem:[#allocation14] sm:$0xff]  }
  0xaa   :  { %854 = vmatprep.subr.bf16.mxu0 %v1218_v0  ;;  %838 = vmatprep.subr.bf16.mxu1 %v1218_v0  ;;  %v952_v49 = vld [vmem:[#allocation14 + $0x8] sm:$0xff]   ;;  %v953_v50 = vld [vmem:[#allocation14 + $0x10] sm:$0xff]   ;;  %v954_v51 = vld [vmem:[#allocation14 + $0x18] sm:$0xff]   ;;  %p1181_p6 = pnand %p1180_p5, %p1174_p2 }
  0xab   :  { %v955_v52 = vld [vmem:[#allocation14 + $0x20] sm:$0xff]   ;;  %v956_v53 = vld [vmem:[#allocation14 + $0x28] sm:$0xff]   ;;  %v957_v54 = vld [vmem:[#allocation14 + $0x30] sm:$0xff]  }
  0xac   :  { %831 = vmatmul.mubr.msk.bf16.vlgmr.msra.gmra.mrb[0].mxu0 %vm180_vm1, %v934_v4  ;;  %v958_v55 = vld [vmem:[#allocation14 + $0x38] sm:$0xff]  }
  0xad   :  { %870 = vmatprep.mubr.msk.bf16.mxu0 %vm1219_vm0, %v1218_v0  ;;  %839 = vmatpush3.bf16.msra.mxu1 %v937_v6 }
  0xae   :  { %840 = vmatprep.subr.bf16.mxu1 %v1218_v0  ;;  %855 = vmatpush3.bf16.msra.mxu0 %v943_v12  ;;  %v587_v12 = vlaneseq }
  0xaf   :  { %856 = vmatprep.subr.bf16.mxu0 %v1218_v0 }
  0xb1   :  { %841 = vmatpush3.bf16.msra.mxu1 %v938_v7 }
  0xb2   :  { %842 = vmatprep.subr.bf16.mxu1 %v1218_v0  ;;  %857 = vmatpush3.bf16.msra.mxu0 %v944_v13  ;;  %v588_v13 = vand.u32 127, %v587_v12 }
  0xb3   :  { %858 = vmatprep.subr.bf16.mxu0 %v1218_v0 }
  0xb4   :  { %vm589_vm6 = vcmp.lt.s32.totalorder %v588_v13, 8 }
  0xb5   :  { %843 = vmatpush3.bf16.msra.mxu1 %v939_v8 }
  0xb6   :  { %844 = vmatprep.subr.bf16.mxu1 %v1218_v0  ;;  %859 = vmatpush3.bf16.msra.mxu0 %v945_v14 }
  0xb7   :  { %860 = vmatprep.subr.bf16.mxu0 %v1218_v0 }
  0xb9   :  { %845 = vmatpush3.bf16.msra.mxu1 %v940_v9 }
  0xba   :  { %846 = vmatprep.subr.bf16.mxu1 %v1218_v0  ;;  %861 = vmatpush3.bf16.msra.mxu0 %v946_v15 }
  0xbb   :  { %862 = vmatprep.subr.bf16.mxu0 %v1218_v0 }
  0xbd   :  { %847 = vmatpush3.bf16.msra.mxu1 %v941_v10 }
  0xbe   :  { %848 = vmatprep.subr.bf16.mxu1 %v1218_v0  ;;  %863 = vmatpush3.bf16.msra.mxu0 %v947_v16 }
  0xbf   :  { %864 = vmatprep.subr.bf16.mxu0 %v1218_v0 }
  0xc1   :  { %849 = vmatpush3.bf16.msra.mxu1 %v942_v11 }
  0xc2   :  { %874 = vmatprep.subr.bf16.mxu1 %v1218_v0  ;;  %865 = vmatpush3.bf16.msra.mxu0 %v948_v17 }
  0xc3   :  { %866 = vmatprep.subr.bf16.mxu0 %v1218_v0 }
  0xc6   :  { %867 = vmatpush3.bf16.msra.mxu0 %v949_v28  ;;  %v965_v28 = vld [vmem:[#allocation16 + $0x30] sm:$0xff]  }
  0xc7   :  { %868 = vmatprep.subr.bf16.mxu0 %v1218_v0 }
  0xca   :  { %869 = vmatpush3.bf16.msra.mxu0 %v950_v29  ;;  %v596_v29 = vcvt.s32.f32 %v588_v13 }
  0xcb   :  { %894 = vmatprep.subr.bf16.mxu0 %v1218_v0 }
 0x17f   :  { %v218_v19 = vpop.f32.mrb[0].mxu0 }
 0x180   :  { %v832_v20 = vpop.f32.mrb[1].mxu0  ;;  %v219_v22 = vadd.f32 %v744_v18, %v218_v19 }
 0x181   :  { %v221_v21 = vpop.f32.mrb[2].mxu0 }
 0x182   :  { %v222_v23 = vadd.f32 %v744_v18, %v221_v21  ;;  %v833_v24 = vpop.f32.mrb[3].mxu0 }
 0x183   :  { %v961_v24 = vld [vmem:[#allocation16 + $0x10] sm:$0xff]  }
 0x184   :  { %v225_v25 = vpack.c.bf16 %v222_v23, %v219_v22  ;;  %v959_v22 = vld [vmem:[#allocation16] sm:$0xff]   ;;  %v960_v23 = vld [vmem:[#allocation16 + $0x8] sm:$0xff]  }
 0x186   :  { %v226_v27 = vmax.bf16 %v1220_v26, %v225_v25  ;;  %v962_v25 = vld [vmem:[#allocation16 + $0x18] sm:$0xff]  }
 0x188   :  { %851 = vmatmul.mubr.bf16.vlgmr.msra.gmra.mrb[0].mxu1 %v226_v27  ;;  %v964_v27 = vld [vmem:[#allocation16 + $0x28] sm:$0xff]  }
 0x189   :  { %890 = vmatprep.mubr.msk.bf16.mxu1 %vm1219_vm0, %v1218_v0  ;;  %875 = vmatpush3.bf16.msra.mxu1 %v951_v48 }
 0x18a   :  { %876 = vmatprep.subr.bf16.mxu1 %v1218_v0 }
 0x18d   :  { %877 = vmatpush3.bf16.msra.mxu1 %v952_v49 }
 0x18e   :  { %878 = vmatprep.subr.bf16.mxu1 %v1218_v0 }
 0x191   :  { %879 = vmatpush3.bf16.msra.mxu1 %v953_v50 }
 0x192   :  { %880 = vmatprep.subr.bf16.mxu1 %v1218_v0 }
 0x195   :  { %881 = vmatpush3.bf16.msra.mxu1 %v954_v51 }
 0x196   :  { %882 = vmatprep.subr.bf16.mxu1 %v1218_v0 }
 0x199   :  { %883 = vmatpush3.bf16.msra.mxu1 %v955_v52 }
 0x19a   :  { %884 = vmatprep.subr.bf16.mxu1 %v1218_v0 }
 0x19d   :  { %885 = vmatpush3.bf16.msra.mxu1 %v956_v53 }
 0x19e   :  { %886 = vmatprep.subr.bf16.mxu1 %v1218_v0 }
 0x1a1   :  { %887 = vmatpush3.bf16.msra.mxu1 %v957_v54 }
 0x1a2   :  { %888 = vmatprep.subr.bf16.mxu1 %v1218_v0 }
 0x1a5   :  { %889 = vmatpush3.bf16.msra.mxu1 %v958_v55 }
 0x25b   :  { %v332_v31 = vpop.f32.mrb[0].mxu1 }
 0x25c   :  { %v852_v32 = vpop.f32.mrb[1].mxu1  ;;  %v333_v34 = vadd.f32 %v749_v30, %v332_v31 }
 0x25d   :  { %v335_v33 = vpop.f32.mrb[2].mxu1 }
 0x25e   :  { %v336_v35 = vadd.f32 %v749_v30, %v335_v33  ;;  %v853_v36 = vpop.f32.mrb[3].mxu1 }
 0x260   :  { %v339_v37 = vpack.c.bf16 %v336_v35, %v333_v34  ;;  %v966_v34 = vld [vmem:[#allocation16 + $0x38] sm:$0xff]  }
 0x262   :  { %v340_v38 = vmax.bf16 %v1220_v26, %v339_v37  ;;  %v963_v26 = vld [vmem:[#allocation16 + $0x20] sm:$0xff]   ;;  %v1221_v37 = vmov 1.0|1.0  }
 0x264   :  { %871 = vmatmul.mubr.bf16.vlgmr.msra.gmra.mrb[4].mxu0 %v340_v38 }
 0x265   :  { %910 = vmatprep.mubr.msk.bf16.mxu0 %vm1219_vm0, %v1218_v0  ;;  %895 = vmatpush3.bf16.msra.mxu0 %v959_v22 }
 0x266   :  { %896 = vmatprep.subr.bf16.mxu0 %v1218_v0 }
 0x269   :  { %897 = vmatpush3.bf16.msra.mxu0 %v960_v23 }
 0x26a   :  { %898 = vmatprep.subr.bf16.mxu0 %v1218_v0 }
 0x26d   :  { %899 = vmatpush3.bf16.msra.mxu0 %v961_v24 }
 0x26e   :  { %900 = vmatprep.subr.bf16.mxu0 %v1218_v0 }
 0x271   :  { %901 = vmatpush3.bf16.msra.mxu0 %v962_v25 }
 0x272   :  { %902 = vmatprep.subr.bf16.mxu0 %v1218_v0 }
 0x275   :  { %903 = vmatpush3.bf16.msra.mxu0 %v963_v26 }
 0x276   :  { %904 = vmatprep.subr.bf16.mxu0 %v1218_v0 }
 0x279   :  { %905 = vmatpush3.bf16.msra.mxu0 %v964_v27 }
 0x27a   :  { %906 = vmatprep.subr.bf16.mxu0 %v1218_v0 }
 0x27d   :  { %907 = vmatpush3.bf16.msra.mxu0 %v965_v28 }
 0x27e   :  { %908 = vmatprep.subr.bf16.mxu0 %v1218_v0 }
 0x281   :  { %909 = vmatpush3.bf16.msra.mxu0 %v966_v34 }
 0x337   :  { %v446_v40 = vpop.f32.mrb[4].mxu0 }
 0x338   :  { %v447_v41 = vadd.f32 %v758_v39, %v446_v40  ;;  %v872_v42 = vpop.f32.mrb[5].mxu0 }
 0x339   :  { %v449_v43 = vpop.f32.mrb[6].mxu0 }
 0x33a   :  { %v450_v44 = vadd.f32 %v758_v39, %v449_v43  ;;  %v873_v45 = vpop.f32.mrb[7].mxu0  ;;  %v453_v46 = vmul.f32 %v447_v41, %v447_v41 }
 0x33c   :  { %455 = vadd.xlane.f32.xlu0 %v453_v46  ;;  %v454_v47 = vmul.f32 %v450_v44, %v450_v44 }
 0x340   :  { %457 = vadd.xlane.f32.xlu0 %v454_v47 }
 0x3c9   :  { %v456_v56 = vpop.xlane.xlu0 %455 }
 0x3ca   :  { %967 = vrsqrt.f32 %v456_v56  ;;  %vm461_vm2 = vcmp.eq.f32.partialorder %v456_v56, inf  ;;  %v464_v60 = vand.u32 2147483648, %v456_v56  ;;  %vm463_vm3 = vcmp.eq.f32.partialorder %v456_v56, 0.0 }
 0x3cd   :  { %v458_v57 = vpop.xlane.xlu0 %457 }
 0x3ce   :  { %969 = vrsqrt.f32 %v458_v57  ;;  %vm468_vm4 = vcmp.eq.f32.partialorder %v458_v57, inf  ;;  %v471_v3 = vand.u32 2147483648, %v458_v57  ;;  %vm470_vm5 = vcmp.eq.f32.partialorder %v458_v57, 0.0 }
 0x3d4   :  { %v968_v58 = vpop.eup %967 }
 0x3d5   :  { %v460_v59 = vmul.f32 %v968_v58, %v456_v56 }
 0x3d7   :  { %v462_v61 = vsel %vm461_vm2, %v456_v56, %v460_v59 }
 0x3d8   :  { %v970_v62 = vpop.eup %969  ;;  %v465_v63 = vsel %vm463_vm3, %v464_v60, %v462_v61 }
 0x3d9   :  { %v473_v1 = vadd.f32 1e-05, %v465_v63  ;;  %v467_v2 = vmul.f32 %v970_v62, %v458_v57 }
 0x3db   :  { %971 = vrcp.f32 %v473_v1  ;;  %v469_v4 = vsel %vm468_vm4, %v458_v57, %v467_v2 }
 0x3dc   :  { %v472_v5 = vsel %vm470_vm5, %v471_v3, %v469_v4 }
 0x3dd   :  { %v474_v6 = vadd.f32 1e-05, %v472_v5 }
 0x3df   :  { %973 = vrcp.f32 %v474_v6 }
 0x3e5   :  { %v972_v7 = vpop.eup %971 }
 0x3e6   :  { %v477_v8 = vmul.f32 %v972_v7, %v447_v41 }
 0x3e8   :  { %717 = vst [vmem:[#allocation17] sm:$0xff] %v477_v8 }
 0x3e9   :  { %v974_v9 = vpop.eup %973 }
 0x3ea   :  { %v478_v10 = vmul.f32 %v974_v9, %v450_v44 }
 0x3ec   :  { %v479_v11 = vpack.c.bf16 %v478_v10, %v477_v8  ;;  %720 = vst [vmem:[#allocation17 + $0x18] sm:$0xff] %v478_v10 }
 0x3ee   :  { %891 = vmatmul.mubr.bf16.vlgmr.msra.gmra.mrb[4].mxu1 %v479_v11 }
 0x4c1   :  { %v578_v14 = vpop.f32.mrb[4].mxu1 }
 0x4c2   :  { %v585_v15 = vmul.f32 10.0, %v578_v14  ;;  %v892_v16 = vpop.f32.mrb[5].mxu1 }
 0x4c3   :  { %v581_v17 = vpop.f32.mrb[6].mxu1 }
 0x4c4   :  { %v586_v18 = vmul.f32 10.0, %v581_v17  ;;  %v893_v19 = vpop.f32.mrb[7].mxu1  ;;  %v590_v20 = vsel %vm589_vm6, %v585_v15, -1e+30 }
 0x4c5   :  { %592 = vmax.xlane.f32.xlu1 %v590_v20 }
 0x4c6   :  { %v591_v21 = vsel %vm589_vm6, %v586_v18, -1e+30 }
 0x4c9   :  { %594 = vmax.xlane.f32.xlu1 %v591_v21 }
 0x552   :  { %v593_v30 = vpop.xlane.xlu1 %592 }
 0x553   :  { %vm597_vm7 = vcmp.eq.f32.partialorder %v590_v20, %v593_v30 }
 0x554   :  { %v599_v31 = vsel %vm597_vm7, %v596_v29, 128.0 }
 0x555   :  { %601 = vmin.xlane.f32.xlu0 %v599_v31 }
 0x556   :  { %v595_v32 = vpop.xlane.xlu1 %594 }
 0x557   :  { %vm598_vm8 = vcmp.eq.f32.partialorder %v591_v21, %v595_v32 }
 0x558   :  { %v600_v33 = vsel %vm598_vm8, %v596_v29, 128.0 }
 0x559   :  { %603 = vmin.xlane.f32.xlu1 %v600_v33 }
 0x5e2   :  { %v602_v35 = vpop.xlane.xlu0 %601 }
 0x5e3   :  { %719 = vst [vmem:[#allocation17 + $0x10] sm:$0xff] %v602_v35  ;;  %vm605_vm9 = vcmp.eq.f32.partialorder %v596_v29, %v602_v35 }
 0x5e6   :  { %v604_v36 = vpop.xlane.xlu1 %603 }
 0x5e7   :  { %vm606_vm10 = vcmp.eq.f32.partialorder %v596_v29, %v604_v36  ;;  %722 = vst [vmem:[#allocation17 + $0x28] sm:$0xff] %v604_v36 }
 0x5e8   :  { %vm785_vm11 = vmpackc.low %vm606_vm10, %vm605_vm9 }
 0x5e9   :  { %911 = vmatmul.mubr.msk.bf16.vlgmr.msra.gmra.mrb[8].mxu0 %vm785_vm11, %v1221_v37 }
 0x6bc   :  { %v710_v0 = vpop.f32.mrb[8].mxu0 }
 0x6bd   :  { %718 = vst [vmem:[#allocation17 + $0x8] sm:$0xff] %v710_v0  ;;  %v912_v38 = vpop.f32.mrb[9].mxu0 }
 0x6be   :  { %v713_v39 = vpop.f32.mrb[10].mxu0 }
 0x6bf   :  { %721 = vst [vmem:[#allocation17 + $0x20] sm:$0xff] %v713_v39  ;;  %v913_v40 = vpop.f32.mrb[11].mxu0 }
 0x6c0   :  { %1184 = shalt.err (!%p1181_p6)
}
 0x6c1   :  { %s1185_s28 = scalar_lea.hbm %s1480_s9, 768 }
 0x6c2   :  { %p1186_p7 = scmp.ne.s32.totalorder %s1480_s9, %s1185_s28  ;;  %p1189_p8 = scmp.lt.u32.totalorder %s1185_s28, %s1480_s9 }
 0x6c4   :  { %p1191_p9 = pnand %p1189_p8, %p1186_p7 }
 0x6c6   :  { %1194 = shalt.err (!%p1191_p9)
}
 0x6c7   :  { %s1223_s1 = smov 384   ;;  %s1224_s10 = smov 24  }
 0x6c8   :  { %734 = dma.vmem_to_hbm [thread:$0]  %s729_s21, 768, %s1480_s9, [#allocation4], %s1223_s1, %s1223_s1, %s1224_s10  }
 0x6c9   :  { %1205 = dma.done.wait [#allocation4], 768  }
 0x6ca   :  { %1206 = vsyncadd [#allocation4], 4294966528 }
 0x6cb   :  { %738 = vsyncpa [#allocation3], 1 }
 0x6cc   :  { %739 = vsyncpa [#allocation6], 1 }
 0x6cd   :  { %740 = vsyncpa [#allocation9], 1 }
 0x6ce   :  { %741 = vsyncpa [#allocation12], 1 }
 0x6cf   :  { %742 = vsyncpa [#allocation15], 1 }
 0x6d0   :  { %743 = vsyncpa [#allocation4], 1 }

</bundles_post_ra>
